<compile_context>
chip_gen: v7x
topology: tpu7x:2x2x1
jax: 0.10.0
libtpu: 0.0.40
codegen_flags: <defaults>
</compile_context>

<pallas_src>
import functools

import jax
import jax.numpy as jnp
from jax import lax
from jax.experimental import pallas as pl
from jax.experimental.pallas import tpu as pltpu

VMEM = pltpu.MemorySpace.VMEM
BF16 = jnp.bfloat16
F32 = jnp.float32


def _vmem_spec():
    return pl.BlockSpec(memory_space=VMEM)


def _batch_norm_train(x, gamma, beta, eps=1e-5):
    # PyTorch BatchNorm1d, training-mode statistics (biased variance), in f32.
    mean = jnp.mean(x, axis=0, keepdims=True)
    var = jnp.mean((x - mean) ** 2, axis=0, keepdims=True)
    return (x - mean) * lax.rsqrt(var + eps) * gamma + beta


# --------------------------------------------------------------------------
# Fused kernel: embeddings + all GatedGCN layers + mean readout
# --------------------------------------------------------------------------
def gated_gcn_net_kernel(
    nf_ref, ef_ref, src_ref, dst_ref, sn_ref, se_ref, ro_ref,
    ehW_ref, ehb_ref, eew_ref, eeb_ref,
    *rest,
    residuals,
):
    n_layers = len(residuals)
    layer_refs = rest[: 8 * n_layers]
    out_ref = rest[8 * n_layers]

    src = src_ref[...]          # [E, N] bf16 one-hot of edge source (exact)
    dst = dst_ref[...]          # [E, N] bf16 one-hot of edge destination
    sn = sn_ref[...]            # [N, 1] f32 graph-norm for nodes
    se = se_ref[...]            # [E, 1] f32 graph-norm for edges

    # embedding_h: Linear(in_dim, in_dim)  -- bf16 MXU matmul, f32 accumulation
    h = (
        jnp.dot(nf_ref[...].astype(BF16), ehW_ref[...],
                preferred_element_type=F32)
        + ehb_ref[...]
    )
    # embedding_e: Linear(1, in_dim) == broadcast mul-add on the VPU
    e = ef_ref[...] * eew_ref[...] + eeb_ref[...]            # [E, Din] f32

    for l in range(n_layers):
        (WnT, nb, CwT, Cb,
         bnh_g, bnh_b, bne_g, bne_b) = layer_refs[8 * l: 8 * l + 8]
        dout = WnT.shape[1] // 4

        # Fused A|B|D|E node linear -> one lane-dense matmul (f32 acc).
        fused = (
            jnp.dot(h.astype(BF16), WnT[...], preferred_element_type=F32)
            + nb[...]
        )                                                     # [N, 4*Dout]
        Ah = fused[:, 0 * dout:1 * dout]
        Eh = fused[:, 3 * dout:4 * dout]

        Ce = (
            jnp.dot(e.astype(BF16), CwT[...], preferred_element_type=F32)
            + Cb[...]
        )                                                     # [E, Dout]

        # Gather node features onto edges (DGL edges.src / edges.dst) via
        # incidence matmuls; B and D share one gather.
        BD_src = jnp.dot(src, fused[:, dout:3 * dout].astype(BF16),
                         preferred_element_type=F32)          # [E, 2*Dout]
        Bh_src = BD_src[:, :dout]
        Dh_src = BD_src[:, dout:]
        Eh_dst = jnp.dot(dst, Eh.astype(BF16),
                         preferred_element_type=F32)          # [E, Dout]

        e_new = Ce + Dh_src + Eh_dst                          # edge update
        sigma = jax.nn.sigmoid(e_new)                         # f32, EUP exp

        # Scatter-sum over destination nodes: contract the E axis of dst
        # directly (transposed-LHS MXU form; no [N, E] copy); num and den
        # fused into one lane-dense dot. Accumulation stays f32.
        msg = jnp.concatenate([sigma * Bh_src, sigma], axis=1)   # [E, 2*Dout]
        scat = lax.dot_general(
            dst, msg.astype(BF16),
            dimension_numbers=(((0,), (0,)), ((), ())),
            preferred_element_type=F32,
        )                                                       # [N, 2*Dout]
        num = scat[:, :dout]
        den = scat[:, dout:]

        h_new = Ah + num * pl.reciprocal(den + 1e-6, approx=True)

        # graph norm
        h_new = h_new * sn
        e_new = e_new * se

        # batch norm (training-mode batch stats), f32
        h_new = _batch_norm_train(h_new, bnh_g[...], bnh_b[...])
        e_new = _batch_norm_train(e_new, bne_g[...], bne_b[...])

        # ReLU
        h_new = jnp.maximum(h_new, 0.0)
        e_new = jnp.maximum(e_new, 0.0)

        if residuals[l]:
            h_new = h + h_new
            e_new = e + e_new

        # dropout p=0.0 -> identity
        h, e = h_new, e_new

    # readout='mean': per-graph mean of node features (readout_mat @ h)
    out_ref[...] = jnp.dot(ro_ref[...], h, preferred_element_type=F32)


# --------------------------------------------------------------------------
# Parameter packing (done ONCE, not per forward)
# --------------------------------------------------------------------------
def pack_params(raw):
    packed = {
        "emb_h_wT": raw["emb_h_w"].T.astype(BF16),             # [Din, Din]
        "emb_h_b": raw["emb_h_b"].reshape(1, -1).astype(F32),
        "emb_e_w": raw["emb_e_w"].reshape(1, -1).astype(F32),  # [1, Din]
        "emb_e_b": raw["emb_e_b"].reshape(1, -1).astype(F32),
        "layers": [],
    }
    residuals = []
    for lp in raw["layers"]:
        WnT = jnp.concatenate(
            [lp["A_w"].T, lp["B_w"].T, lp["D_w"].T, lp["E_w"].T], axis=1
        ).astype(BF16)                                         # [Din, 4*Dout]
        nb = jnp.concatenate(
            [lp["A_b"], lp["B_b"], lp["D_b"], lp["E_b"]]
        ).reshape(1, -1).astype(F32)
        packed["layers"].append({
            "WnT": WnT, "nb": nb,
            "CwT": lp["C_w"].T.astype(BF16),
            "Cb": lp["C_b"].reshape(1, -1).astype(F32),
            "bnh_g": lp["bnh_g"].reshape(1, -1).astype(F32),
            "bnh_b": lp["bnh_b"].reshape(1, -1).astype(F32),
            "bne_g": lp["bne_g"].reshape(1, -1).astype(F32),
            "bne_b": lp["bne_b"].reshape(1, -1).astype(F32),
        })
        residuals.append(bool(lp["residual"]))
    return packed, residuals


def make_forward(packed, residuals):
    kernel = functools.partial(gated_gcn_net_kernel, residuals=tuple(residuals))
    dout_last = packed["layers"][-1]["WnT"].shape[1] // 4

    def forward(nodes_feat, edges_feat, src_oh, dst_oh,
                snorm_n, snorm_e, readout_mat):
        args = [nodes_feat, edges_feat, src_oh, dst_oh,
                snorm_n, snorm_e, readout_mat,
                packed["emb_h_wT"], packed["emb_h_b"],
                packed["emb_e_w"], packed["emb_e_b"]]
        for lp in packed["layers"]:
            args += [lp["WnT"], lp["nb"], lp["CwT"], lp["Cb"],
                     lp["bnh_g"], lp["bnh_b"], lp["bne_g"], lp["bne_b"]]
        n_graphs = readout_mat.shape[0]
        return pl.pallas_call(
            kernel,
            out_shape=jax.ShapeDtypeStruct((n_graphs, dout_last), jnp.float32),
            in_specs=[_vmem_spec() for _ in args],
            out_specs=_vmem_spec(),
            compiler_params=pltpu.CompilerParams(
                vmem_limit_bytes=64 * 1024 * 1024),
        )(*args)

    return jax.jit(forward)


# --------------------------------------------------------------------------
# Main
# --------------------------------------------------------------------------
if __name__ == "__main__":
    key = jax.random.PRNGKey(0)
    keys = iter(jax.random.split(key, 64))

    in_dim = 16
    hidden_dims = [32, 32]
    n_graphs = 2
    nodes_per_graph = 8
    N = n_graphs * nodes_per_graph

    # Small batched graph: a bidirectional ring per graph.
    src_list, dst_list = [], []
    for g in range(n_graphs):
        base = g * nodes_per_graph
        for i in range(nodes_per_graph):
            j = (i + 1) % nodes_per_graph
            src_list += [base + i, base + j]
            dst_list += [base + j, base + i]
    E = len(src_list)

    src_idx = jnp.array(src_list, dtype=jnp.int32)
    dst_idx = jnp.array(dst_list, dtype=jnp.int32)
    # Exact 0/1 incidence stored in bf16 (halves VMEM/HBM, values exact).
    src_oh = jax.nn.one_hot(src_idx, N, dtype=jnp.bfloat16)    # [E, N]
    dst_oh = jax.nn.one_hot(dst_idx, N, dtype=jnp.bfloat16)    # [E, N]

    def lin_init(out_d, in_d):
        w = jax.random.normal(next(keys), (out_d, in_d), jnp.float32) * 0.1
        b = jax.random.normal(next(keys), (out_d,), jnp.float32) * 0.01
        return w, b

    raw = {}
    raw["emb_h_w"], raw["emb_h_b"] = lin_init(in_dim, in_dim)  # Linear(in, in)
    raw["emb_e_w"], raw["emb_e_b"] = lin_init(in_dim, 1)       # Linear(1, in)

    layers = []
    _in = in_dim
    for hd in hidden_dims:
        lp = {}
        for name in ["A", "B", "C", "D", "E"]:
            lp[name + "_w"], lp[name + "_b"] = lin_init(hd, _in)
        lp["bnh_g"] = jnp.ones((hd,), jnp.float32)
        lp["bnh_b"] = jnp.zeros((hd,), jnp.float32)
        lp["bne_g"] = jnp.ones((hd,), jnp.float32)
        lp["bne_b"] = jnp.zeros((hd,), jnp.float32)
        lp["residual"] = (_in == hd)     # residual disabled when dims differ
        layers.append(lp)
        _in = hd
    raw["layers"] = layers

    nodes_feat = jax.random.normal(next(keys), (N, in_dim), jnp.float32)
    edges_feat = jax.random.normal(next(keys), (E, 1), jnp.float32)

    # nodes_num_norm_sqrt / edges_num_norm_sqrt: 1/sqrt(#nodes or #edges per graph)
    snorm_n = jnp.full((N, 1), 1.0 / (nodes_per_graph ** 0.5), jnp.float32)
    edges_per_graph = E // n_graphs
    snorm_e = jnp.full((E, 1), 1.0 / (edges_per_graph ** 0.5), jnp.float32)

    # mean-readout matrix [G, N]
    readout_mat = (
        jnp.repeat(jnp.eye(n_graphs, dtype=jnp.float32), nodes_per_graph, axis=1)
        / nodes_per_graph
    )

    packed, residuals = pack_params(raw)
    forward = make_forward(packed, residuals)

    hg = forward(nodes_feat, edges_feat, src_oh, dst_oh,
                 snorm_n, snorm_e, readout_mat)
    hg = jax.block_until_ready(hg)
    assert hg.shape == (n_graphs, hidden_dims[-1])
    assert bool(jnp.all(jnp.isfinite(hg)))
    print("KERNEL_OK")
</pallas_src>

<mosaic_0001>
module attributes {stable_mosaic.version = 11 : i64} {
  func.func @gated_gcn_net_kernel(%arg0: memref<16x16xf32, #tpu.memory_space<vmem>>, %arg1: memref<32x1xf32, #tpu.memory_space<vmem>>, %arg2: memref<32x16xbf16, #tpu.memory_space<vmem>>, %arg3: memref<32x16xbf16, #tpu.memory_space<vmem>>, %arg4: memref<16x1xf32, #tpu.memory_space<vmem>>, %arg5: memref<32x1xf32, #tpu.memory_space<vmem>>, %arg6: memref<2x16xf32, #tpu.memory_space<vmem>>, %arg7: memref<16x16xbf16, #tpu.memory_space<vmem>>, %arg8: memref<1x16xf32, #tpu.memory_space<vmem>>, %arg9: memref<1x16xf32, #tpu.memory_space<vmem>>, %arg10: memref<1x16xf32, #tpu.memory_space<vmem>>, %arg11: memref<16x128xbf16, #tpu.memory_space<vmem>>, %arg12: memref<1x128xf32, #tpu.memory_space<vmem>>, %arg13: memref<16x32xbf16, #tpu.memory_space<vmem>>, %arg14: memref<1x32xf32, #tpu.memory_space<vmem>>, %arg15: memref<1x32xf32, #tpu.memory_space<vmem>>, %arg16: memref<1x32xf32, #tpu.memory_space<vmem>>, %arg17: memref<1x32xf32, #tpu.memory_space<vmem>>, %arg18: memref<1x32xf32, #tpu.memory_space<vmem>>, %arg19: memref<32x128xbf16, #tpu.memory_space<vmem>>, %arg20: memref<1x128xf32, #tpu.memory_space<vmem>>, %arg21: memref<32x32xbf16, #tpu.memory_space<vmem>>, %arg22: memref<1x32xf32, #tpu.memory_space<vmem>>, %arg23: memref<1x32xf32, #tpu.memory_space<vmem>>, %arg24: memref<1x32xf32, #tpu.memory_space<vmem>>, %arg25: memref<1x32xf32, #tpu.memory_space<vmem>>, %arg26: memref<1x32xf32, #tpu.memory_space<vmem>>, %arg27: memref<2x32xf32, #tpu.memory_space<vmem>>) attributes {dimension_semantics = [], scalar_prefetch = 0 : i64, scratch_operands = 0 : i64, tpu.core_type = #tpu.core_type<tc>} {
    %c0 = arith.constant 0 : index
    %c0_0 = arith.constant 0 : index
    %0 = vector.load %arg2[%c0, %c0_0] : memref<32x16xbf16, #tpu.memory_space<vmem>>, vector<32x16xbf16>
    %c0_1 = arith.constant 0 : index
    %c0_2 = arith.constant 0 : index
    %1 = vector.load %arg3[%c0_1, %c0_2] : memref<32x16xbf16, #tpu.memory_space<vmem>>, vector<32x16xbf16>
    %c0_3 = arith.constant 0 : index
    %c0_4 = arith.constant 0 : index
    %2 = vector.load %arg4[%c0_3, %c0_4] : memref<16x1xf32, #tpu.memory_space<vmem>>, vector<16x1xf32>
    %c0_5 = arith.constant 0 : index
    %c0_6 = arith.constant 0 : index
    %3 = vector.load %arg5[%c0_5, %c0_6] : memref<32x1xf32, #tpu.memory_space<vmem>>, vector<32x1xf32>
    %c0_7 = arith.constant 0 : index
    %c0_8 = arith.constant 0 : index
    %4 = vector.load %arg0[%c0_7, %c0_8] : memref<16x16xf32, #tpu.memory_space<vmem>>, vector<16x16xf32>
    %5 = arith.truncf %4 : vector<16x16xf32> to vector<16x16xbf16>
    %c0_9 = arith.constant 0 : index
    %c0_10 = arith.constant 0 : index
    %6 = vector.load %arg7[%c0_9, %c0_10] : memref<16x16xbf16, #tpu.memory_space<vmem>>, vector<16x16xbf16>
    %cst = arith.constant dense<0.000000e+00> : vector<16x16xf32>
    %7 = tpu.matmul %5, %6, %cst {dimension_numbers = #tpu.dot_dimension_numbers<[1], [0], [0], [1], [0, 0, 1, 1], [], []>} : vector<16x16xbf16>, vector<16x16xbf16>, vector<16x16xf32> -> vector<16x16xf32>
    %c0_11 = arith.constant 0 : index
    %c0_12 = arith.constant 0 : index
    %8 = vector.load %arg8[%c0_11, %c0_12] : memref<1x16xf32, #tpu.memory_space<vmem>>, vector<1x16xf32>
    %9 = vector.broadcast %8 : vector<1x16xf32> to vector<16x16xf32>
    %10 = arith.addf %7, %9 : vector<16x16xf32>
    %c0_13 = arith.constant 0 : index
    %c0_14 = arith.constant 0 : index
    %11 = vector.load %arg1[%c0_13, %c0_14] : memref<32x1xf32, #tpu.memory_space<vmem>>, vector<32x1xf32>
    %c0_15 = arith.constant 0 : index
    %c0_16 = arith.constant 0 : index
    %12 = vector.load %arg9[%c0_15, %c0_16] : memref<1x16xf32, #tpu.memory_space<vmem>>, vector<1x16xf32>
    %13 = vector.broadcast %11 : vector<32x1xf32> to vector<32x16xf32>
    %14 = vector.broadcast %12 : vector<1x16xf32> to vector<32x16xf32>
    %15 = arith.mulf %13, %14 : vector<32x16xf32>
    %c0_17 = arith.constant 0 : index
    %c0_18 = arith.constant 0 : index
    %16 = vector.load %arg10[%c0_17, %c0_18] : memref<1x16xf32, #tpu.memory_space<vmem>>, vector<1x16xf32>
    %17 = vector.broadcast %16 : vector<1x16xf32> to vector<32x16xf32>
    %18 = arith.addf %15, %17 : vector<32x16xf32>
    %19 = arith.truncf %10 : vector<16x16xf32> to vector<16x16xbf16>
    %c0_19 = arith.constant 0 : index
    %c0_20 = arith.constant 0 : index
    %20 = vector.load %arg11[%c0_19, %c0_20] : memref<16x128xbf16, #tpu.memory_space<vmem>>, vector<16x128xbf16>
    %cst_21 = arith.constant dense<0.000000e+00> : vector<16x128xf32>
    %21 = tpu.matmul %19, %20, %cst_21 {dimension_numbers = #tpu.dot_dimension_numbers<[1], [0], [0], [1], [0, 0, 1, 1], [], []>} : vector<16x16xbf16>, vector<16x128xbf16>, vector<16x128xf32> -> vector<16x128xf32>
    %c0_22 = arith.constant 0 : index
    %c0_23 = arith.constant 0 : index
    %22 = vector.load %arg12[%c0_22, %c0_23] : memref<1x128xf32, #tpu.memory_space<vmem>>, vector<1x128xf32>
    %23 = vector.broadcast %22 : vector<1x128xf32> to vector<16x128xf32>
    %24 = arith.addf %21, %23 : vector<16x128xf32>
    %25 = vector.extract_strided_slice %24 {offsets = [0, 0], sizes = [16, 32], strides = [1, 1]} : vector<16x128xf32> to vector<16x32xf32>
    %26 = vector.extract_strided_slice %24 {offsets = [0, 96], sizes = [16, 32], strides = [1, 1]} : vector<16x128xf32> to vector<16x32xf32>
    %27 = arith.truncf %18 : vector<32x16xf32> to vector<32x16xbf16>
    %c0_24 = arith.constant 0 : index
    %c0_25 = arith.constant 0 : index
    %28 = vector.load %arg13[%c0_24, %c0_25] : memref<16x32xbf16, #tpu.memory_space<vmem>>, vector<16x32xbf16>
    %cst_26 = arith.constant dense<0.000000e+00> : vector<32x32xf32>
    %29 = tpu.matmul %27, %28, %cst_26 {dimension_numbers = #tpu.dot_dimension_numbers<[1], [0], [0], [1], [0, 0, 1, 1], [], []>} : vector<32x16xbf16>, vector<16x32xbf16>, vector<32x32xf32> -> vector<32x32xf32>
    %c0_27 = arith.constant 0 : index
    %c0_28 = arith.constant 0 : index
    %30 = vector.load %arg14[%c0_27, %c0_28] : memref<1x32xf32, #tpu.memory_space<vmem>>, vector<1x32xf32>
    %31 = vector.broadcast %30 : vector<1x32xf32> to vector<32x32xf32>
    %32 = arith.addf %29, %31 : vector<32x32xf32>
    %33 = vector.extract_strided_slice %24 {offsets = [0, 32], sizes = [16, 64], strides = [1, 1]} : vector<16x128xf32> to vector<16x64xf32>
    %34 = arith.truncf %33 : vector<16x64xf32> to vector<16x64xbf16>
    %cst_29 = arith.constant dense<0.000000e+00> : vector<32x64xf32>
    %35 = tpu.matmul %0, %34, %cst_29 {dimension_numbers = #tpu.dot_dimension_numbers<[1], [0], [0], [1], [0, 0, 1, 1], [], []>} : vector<32x16xbf16>, vector<16x64xbf16>, vector<32x64xf32> -> vector<32x64xf32>
    %36 = vector.extract_strided_slice %35 {offsets = [0, 0], sizes = [32, 32], strides = [1, 1]} : vector<32x64xf32> to vector<32x32xf32>
    %37 = vector.extract_strided_slice %35 {offsets = [0, 32], sizes = [32, 32], strides = [1, 1]} : vector<32x64xf32> to vector<32x32xf32>
    %38 = arith.truncf %26 : vector<16x32xf32> to vector<16x32xbf16>
    %cst_30 = arith.constant dense<0.000000e+00> : vector<32x32xf32>
    %39 = tpu.matmul %1, %38, %cst_30 {dimension_numbers = #tpu.dot_dimension_numbers<[1], [0], [0], [1], [0, 0, 1, 1], [], []>} : vector<32x16xbf16>, vector<16x32xbf16>, vector<32x32xf32> -> vector<32x32xf32>
    %40 = arith.addf %32, %37 : vector<32x32xf32>
    %41 = arith.addf %40, %39 : vector<32x32xf32>
    %42 = arith.negf %41 : vector<32x32xf32>
    %43 = math.exp %42 : vector<32x32xf32>
    %cst_31 = arith.constant 1.000000e+00 : f32
    %44 = vector.broadcast %cst_31 : f32 to vector<32x32xf32>
    %45 = arith.addf %44, %43 : vector<32x32xf32>
    %46 = arith.divf %44, %45 : vector<32x32xf32>
    %47 = arith.mulf %46, %36 : vector<32x32xf32>
    %48 = tpu.concatenate %47, %46 in 1 : vector<32x32xf32>, vector<32x32xf32> -> vector<32x64xf32>
    %49 = arith.truncf %48 : vector<32x64xf32> to vector<32x64xbf16>
    %cst_32 = arith.constant dense<0.000000e+00> : vector<16x64xf32>
    %50 = tpu.matmul %1, %49, %cst_32 {dimension_numbers = #tpu.dot_dimension_numbers<[0], [0], [1], [1], [0, 1, 1, 1], [], []>} : vector<32x16xbf16>, vector<32x64xbf16>, vector<16x64xf32> -> vector<16x64xf32>
    %51 = vector.extract_strided_slice %50 {offsets = [0, 0], sizes = [16, 32], strides = [1, 1]} : vector<16x64xf32> to vector<16x32xf32>
    %52 = vector.extract_strided_slice %50 {offsets = [0, 32], sizes = [16, 32], strides = [1, 1]} : vector<16x64xf32> to vector<16x32xf32>
    %cst_33 = arith.constant 9.99999997E-7 : f32
    %53 = vector.broadcast %cst_33 : f32 to vector<16x32xf32>
    %54 = arith.addf %52, %53 : vector<16x32xf32>
    %55 = tpu.reciprocal %54 {approx = true} : vector<16x32xf32> -> vector<16x32xf32>
    %56 = arith.mulf %51, %55 : vector<16x32xf32>
    %57 = arith.addf %25, %56 : vector<16x32xf32>
    %58 = vector.broadcast %2 : vector<16x1xf32> to vector<16x32xf32>
    %59 = arith.mulf %57, %58 : vector<16x32xf32>
    %60 = vector.broadcast %3 : vector<32x1xf32> to vector<32x32xf32>
    %61 = arith.mulf %41, %60 : vector<32x32xf32>
    %c0_34 = arith.constant 0 : index
    %c0_35 = arith.constant 0 : index
    %62 = vector.load %arg15[%c0_34, %c0_35] : memref<1x32xf32, #tpu.memory_space<vmem>>, vector<1x32xf32>
    %c0_36 = arith.constant 0 : index
    %c0_37 = arith.constant 0 : index
    %63 = vector.load %arg16[%c0_36, %c0_37] : memref<1x32xf32, #tpu.memory_space<vmem>>, vector<1x32xf32>
    %cst_38 = arith.constant dense<0.000000e+00> : vector<32xf32>
    %64 = vector.multi_reduction <add>, %59, %cst_38 [0] : vector<16x32xf32> to vector<32xf32>
    %65 = vector.shape_cast %64 : vector<32xf32> to vector<1x32xf32>
    %cst_39 = arith.constant 1.600000e+01 : f32
    %66 = vector.broadcast %cst_39 : f32 to vector<1x32xf32>
    %67 = arith.divf %65, %66 : vector<1x32xf32>
    %68 = vector.broadcast %67 : vector<1x32xf32> to vector<16x32xf32>
    %69 = arith.subf %59, %68 : vector<16x32xf32>
    %70 = arith.mulf %69, %69 : vector<16x32xf32>
    %cst_40 = arith.constant dense<0.000000e+00> : vector<32xf32>
    %71 = vector.multi_reduction <add>, %70, %cst_40 [0] : vector<16x32xf32> to vector<32xf32>
    %72 = vector.shape_cast %71 : vector<32xf32> to vector<1x32xf32>
    %cst_41 = arith.constant 1.600000e+01 : f32
    %73 = vector.broadcast %cst_41 : f32 to vector<1x32xf32>
    %74 = arith.divf %72, %73 : vector<1x32xf32>
    %75 = vector.broadcast %67 : vector<1x32xf32> to vector<16x32xf32>
    %76 = arith.subf %59, %75 : vector<16x32xf32>
    %cst_42 = arith.constant 9.99999974E-6 : f32
    %77 = vector.broadcast %cst_42 : f32 to vector<1x32xf32>
    %78 = arith.addf %74, %77 : vector<1x32xf32>
    %79 = math.rsqrt %78 : vector<1x32xf32>
    %80 = vector.broadcast %79 : vector<1x32xf32> to vector<16x32xf32>
    %81 = arith.mulf %76, %80 : vector<16x32xf32>
    %82 = vector.broadcast %62 : vector<1x32xf32> to vector<16x32xf32>
    %83 = arith.mulf %81, %82 : vector<16x32xf32>
    %84 = vector.broadcast %63 : vector<1x32xf32> to vector<16x32xf32>
    %85 = arith.addf %83, %84 : vector<16x32xf32>
    %c0_43 = arith.constant 0 : index
    %c0_44 = arith.constant 0 : index
    %86 = vector.load %arg17[%c0_43, %c0_44] : memref<1x32xf32, #tpu.memory_space<vmem>>, vector<1x32xf32>
    %c0_45 = arith.constant 0 : index
    %c0_46 = arith.constant 0 : index
    %87 = vector.load %arg18[%c0_45, %c0_46] : memref<1x32xf32, #tpu.memory_space<vmem>>, vector<1x32xf32>
    %cst_47 = arith.constant dense<0.000000e+00> : vector<32xf32>
    %88 = vector.multi_reduction <add>, %61, %cst_47 [0] : vector<32x32xf32> to vector<32xf32>
    %89 = vector.shape_cast %88 : vector<32xf32> to vector<1x32xf32>
    %cst_48 = arith.constant 3.200000e+01 : f32
    %90 = vector.broadcast %cst_48 : f32 to vector<1x32xf32>
    %91 = arith.divf %89, %90 : vector<1x32xf32>
    %92 = vector.broadcast %91 : vector<1x32xf32> to vector<32x32xf32>
    %93 = arith.subf %61, %92 : vector<32x32xf32>
    %94 = arith.mulf %93, %93 : vector<32x32xf32>
    %cst_49 = arith.constant dense<0.000000e+00> : vector<32xf32>
    %95 = vector.multi_reduction <add>, %94, %cst_49 [0] : vector<32x32xf32> to vector<32xf32>
    %96 = vector.shape_cast %95 : vector<32xf32> to vector<1x32xf32>
    %cst_50 = arith.constant 3.200000e+01 : f32
    %97 = vector.broadcast %cst_50 : f32 to vector<1x32xf32>
    %98 = arith.divf %96, %97 : vector<1x32xf32>
    %99 = vector.broadcast %91 : vector<1x32xf32> to vector<32x32xf32>
    %100 = arith.subf %61, %99 : vector<32x32xf32>
    %cst_51 = arith.constant 9.99999974E-6 : f32
    %101 = vector.broadcast %cst_51 : f32 to vector<1x32xf32>
    %102 = arith.addf %98, %101 : vector<1x32xf32>
    %103 = math.rsqrt %102 : vector<1x32xf32>
    %104 = vector.broadcast %103 : vector<1x32xf32> to vector<32x32xf32>
    %105 = arith.mulf %100, %104 : vector<32x32xf32>
    %106 = vector.broadcast %86 : vector<1x32xf32> to vector<32x32xf32>
    %107 = arith.mulf %105, %106 : vector<32x32xf32>
    %108 = vector.broadcast %87 : vector<1x32xf32> to vector<32x32xf32>
    %109 = arith.addf %107, %108 : vector<32x32xf32>
    %cst_52 = arith.constant 0.000000e+00 : f32
    %110 = vector.broadcast %cst_52 : f32 to vector<16x32xf32>
    %111 = arith.maximumf %85, %110 : vector<16x32xf32>
    %cst_53 = arith.constant 0.000000e+00 : f32
    %112 = vector.broadcast %cst_53 : f32 to vector<32x32xf32>
    %113 = arith.maximumf %109, %112 : vector<32x32xf32>
    %114 = arith.truncf %111 : vector<16x32xf32> to vector<16x32xbf16>
    %c0_54 = arith.constant 0 : index
    %c0_55 = arith.constant 0 : index
    %115 = vector.load %arg19[%c0_54, %c0_55] : memref<32x128xbf16, #tpu.memory_space<vmem>>, vector<32x128xbf16>
    %cst_56 = arith.constant dense<0.000000e+00> : vector<16x128xf32>
    %116 = tpu.matmul %114, %115, %cst_56 {dimension_numbers = #tpu.dot_dimension_numbers<[1], [0], [0], [1], [0, 0, 1, 1], [], []>} : vector<16x32xbf16>, vector<32x128xbf16>, vector<16x128xf32> -> vector<16x128xf32>
    %c0_57 = arith.constant 0 : index
    %c0_58 = arith.constant 0 : index
    %117 = vector.load %arg20[%c0_57, %c0_58] : memref<1x128xf32, #tpu.memory_space<vmem>>, vector<1x128xf32>
    %118 = vector.broadcast %117 : vector<1x128xf32> to vector<16x128xf32>
    %119 = arith.addf %116, %118 : vector<16x128xf32>
    %120 = vector.extract_strided_slice %119 {offsets = [0, 0], sizes = [16, 32], strides = [1, 1]} : vector<16x128xf32> to vector<16x32xf32>
    %121 = vector.extract_strided_slice %119 {offsets = [0, 96], sizes = [16, 32], strides = [1, 1]} : vector<16x128xf32> to vector<16x32xf32>
    %122 = arith.truncf %113 : vector<32x32xf32> to vector<32x32xbf16>
    %c0_59 = arith.constant 0 : index
    %c0_60 = arith.constant 0 : index
    %123 = vector.load %arg21[%c0_59, %c0_60] : memref<32x32xbf16, #tpu.memory_space<vmem>>, vector<32x32xbf16>
    %cst_61 = arith.constant dense<0.000000e+00> : vector<32x32xf32>
    %124 = tpu.matmul %122, %123, %cst_61 {dimension_numbers = #tpu.dot_dimension_numbers<[1], [0], [0], [1], [0, 0, 1, 1], [], []>} : vector<32x32xbf16>, vector<32x32xbf16>, vector<32x32xf32> -> vector<32x32xf32>
    %c0_62 = arith.constant 0 : index
    %c0_63 = arith.constant 0 : index
    %125 = vector.load %arg22[%c0_62, %c0_63] : memref<1x32xf32, #tpu.memory_space<vmem>>, vector<1x32xf32>
    %126 = vector.broadcast %125 : vector<1x32xf32> to vector<32x32xf32>
    %127 = arith.addf %124, %126 : vector<32x32xf32>
    %128 = vector.extract_strided_slice %119 {offsets = [0, 32], sizes = [16, 64], strides = [1, 1]} : vector<16x128xf32> to vector<16x64xf32>
    %129 = arith.truncf %128 : vector<16x64xf32> to vector<16x64xbf16>
    %cst_64 = arith.constant dense<0.000000e+00> : vector<32x64xf32>
    %130 = tpu.matmul %0, %129, %cst_64 {dimension_numbers = #tpu.dot_dimension_numbers<[1], [0], [0], [1], [0, 0, 1, 1], [], []>} : vector<32x16xbf16>, vector<16x64xbf16>, vector<32x64xf32> -> vector<32x64xf32>
    %131 = vector.extract_strided_slice %130 {offsets = [0, 0], sizes = [32, 32], strides = [1, 1]} : vector<32x64xf32> to vector<32x32xf32>
    %132 = vector.extract_strided_slice %130 {offsets = [0, 32], sizes = [32, 32], strides = [1, 1]} : vector<32x64xf32> to vector<32x32xf32>
    %133 = arith.truncf %121 : vector<16x32xf32> to vector<16x32xbf16>
    %cst_65 = arith.constant dense<0.000000e+00> : vector<32x32xf32>
    %134 = tpu.matmul %1, %133, %cst_65 {dimension_numbers = #tpu.dot_dimension_numbers<[1], [0], [0], [1], [0, 0, 1, 1], [], []>} : vector<32x16xbf16>, vector<16x32xbf16>, vector<32x32xf32> -> vector<32x32xf32>
    %135 = arith.addf %127, %132 : vector<32x32xf32>
    %136 = arith.addf %135, %134 : vector<32x32xf32>
    %137 = arith.negf %136 : vector<32x32xf32>
    %138 = math.exp %137 : vector<32x32xf32>
    %cst_66 = arith.constant 1.000000e+00 : f32
    %139 = vector.broadcast %cst_66 : f32 to vector<32x32xf32>
    %140 = arith.addf %139, %138 : vector<32x32xf32>
    %141 = arith.divf %139, %140 : vector<32x32xf32>
    %142 = arith.mulf %141, %131 : vector<32x32xf32>
    %143 = tpu.concatenate %142, %141 in 1 : vector<32x32xf32>, vector<32x32xf32> -> vector<32x64xf32>
    %144 = arith.truncf %143 : vector<32x64xf32> to vector<32x64xbf16>
    %cst_67 = arith.constant dense<0.000000e+00> : vector<16x64xf32>
    %145 = tpu.matmul %1, %144, %cst_67 {dimension_numbers = #tpu.dot_dimension_numbers<[0], [0], [1], [1], [0, 1, 1, 1], [], []>} : vector<32x16xbf16>, vector<32x64xbf16>, vector<16x64xf32> -> vector<16x64xf32>
    %146 = vector.extract_strided_slice %145 {offsets = [0, 0], sizes = [16, 32], strides = [1, 1]} : vector<16x64xf32> to vector<16x32xf32>
    %147 = vector.extract_strided_slice %145 {offsets = [0, 32], sizes = [16, 32], strides = [1, 1]} : vector<16x64xf32> to vector<16x32xf32>
    %cst_68 = arith.constant 9.99999997E-7 : f32
    %148 = vector.broadcast %cst_68 : f32 to vector<16x32xf32>
    %149 = arith.addf %147, %148 : vector<16x32xf32>
    %150 = tpu.reciprocal %149 {approx = true} : vector<16x32xf32> -> vector<16x32xf32>
    %151 = arith.mulf %146, %150 : vector<16x32xf32>
    %152 = arith.addf %120, %151 : vector<16x32xf32>
    %153 = vector.broadcast %2 : vector<16x1xf32> to vector<16x32xf32>
    %154 = arith.mulf %152, %153 : vector<16x32xf32>
    %c0_69 = arith.constant 0 : index
    %c0_70 = arith.constant 0 : index
    %155 = vector.load %arg23[%c0_69, %c0_70] : memref<1x32xf32, #tpu.memory_space<vmem>>, vector<1x32xf32>
    %c0_71 = arith.constant 0 : index
    %c0_72 = arith.constant 0 : index
    %156 = vector.load %arg24[%c0_71, %c0_72] : memref<1x32xf32, #tpu.memory_space<vmem>>, vector<1x32xf32>
    %cst_73 = arith.constant dense<0.000000e+00> : vector<32xf32>
    %157 = vector.multi_reduction <add>, %154, %cst_73 [0] : vector<16x32xf32> to vector<32xf32>
    %158 = vector.shape_cast %157 : vector<32xf32> to vector<1x32xf32>
    %cst_74 = arith.constant 1.600000e+01 : f32
    %159 = vector.broadcast %cst_74 : f32 to vector<1x32xf32>
    %160 = arith.divf %158, %159 : vector<1x32xf32>
    %161 = vector.broadcast %160 : vector<1x32xf32> to vector<16x32xf32>
    %162 = arith.subf %154, %161 : vector<16x32xf32>
    %163 = arith.mulf %162, %162 : vector<16x32xf32>
    %cst_75 = arith.constant dense<0.000000e+00> : vector<32xf32>
    %164 = vector.multi_reduction <add>, %163, %cst_75 [0] : vector<16x32xf32> to vector<32xf32>
    %165 = vector.shape_cast %164 : vector<32xf32> to vector<1x32xf32>
    %cst_76 = arith.constant 1.600000e+01 : f32
    %166 = vector.broadcast %cst_76 : f32 to vector<1x32xf32>
    %167 = arith.divf %165, %166 : vector<1x32xf32>
    %168 = vector.broadcast %160 : vector<1x32xf32> to vector<16x32xf32>
    %169 = arith.subf %154, %168 : vector<16x32xf32>
    %cst_77 = arith.constant 9.99999974E-6 : f32
    %170 = vector.broadcast %cst_77 : f32 to vector<1x32xf32>
    %171 = arith.addf %167, %170 : vector<1x32xf32>
    %172 = math.rsqrt %171 : vector<1x32xf32>
    %173 = vector.broadcast %172 : vector<1x32xf32> to vector<16x32xf32>
    %174 = arith.mulf %169, %173 : vector<16x32xf32>
    %175 = vector.broadcast %155 : vector<1x32xf32> to vector<16x32xf32>
    %176 = arith.mulf %174, %175 : vector<16x32xf32>
    %177 = vector.broadcast %156 : vector<1x32xf32> to vector<16x32xf32>
    %178 = arith.addf %176, %177 : vector<16x32xf32>
    %cst_78 = arith.constant 0.000000e+00 : f32
    %179 = vector.broadcast %cst_78 : f32 to vector<16x32xf32>
    %180 = arith.maximumf %178, %179 : vector<16x32xf32>
    %181 = arith.addf %111, %180 : vector<16x32xf32>
    %c0_79 = arith.constant 0 : index
    %c0_80 = arith.constant 0 : index
    %182 = vector.load %arg6[%c0_79, %c0_80] : memref<2x16xf32, #tpu.memory_space<vmem>>, vector<2x16xf32>
    %cst_81 = arith.constant dense<0.000000e+00> : vector<2x32xf32>
    %183 = tpu.matmul %182, %181, %cst_81 {dimension_numbers = #tpu.dot_dimension_numbers<[1], [0], [0], [1], [0, 0, 1, 1], [], []>} : vector<2x16xf32>, vector<16x32xf32>, vector<2x32xf32> -> vector<2x32xf32>
    %c0_82 = arith.constant 0 : index
    %c0_83 = arith.constant 0 : index
    %184 = vector.load %arg27[%c0_82, %c0_83] : memref<2x32xf32, #tpu.memory_space<vmem>>, vector<2x32xf32>
    tpu.vector_store %arg27[%c0_82, %c0_83], %183 {strides = array<i32>} : memref<2x32xf32, #tpu.memory_space<vmem>>, vector<2x32xf32>,
    return
  }
}

</mosaic_0001>

<bundles_post_ra>
// kernel: forward.1
= control target key start
LH: loop header
LB: loop body
LE: loop exit
PB: predicated region body
PF: predicated region fallthrough
CT: control target
= control target key end

     0   :  { %s3323_s0 = inlined_call_operand.hbm [shape: f32[16,16], index: 0, kind: input, shape index: {}]   ;;  %s3324_s1 = inlined_call_operand.hbm [shape: f32[32,1], index: 1, kind: input, shape index: {}]   ;;  %s3325_s2 = inlined_call_operand.hbm [shape: bf16[32,16], index: 2, kind: input, shape index: {}]   ;;  %s3326_s3 = inlined_call_operand.hbm [shape: bf16[32,16], index: 3, kind: input, shape index: {}]   ;;  %s3327_s4 = inlined_call_operand.hbm [shape: f32[16,1], index: 4, kind: input, shape index: {}]   ;;  %s3328_s5 = inlined_call_operand.hbm [shape: f32[32,1], index: 5, kind: input, shape index: {}]   ;;  %s3329_s6 = inlined_call_operand.hbm [shape: f32[2,16], index: 6, kind: input, shape index: {}]   ;;  %s3330_s7 = inlined_call_operand.hbm [shape: bf16[16,16], index: 7, kind: input, shape index: {}]   ;;  %s3331_s8 = inlined_call_operand.hbm [shape: f32[1,16], index: 8, kind: input, shape index: {}]   ;;  %s3332_s9 = inlined_call_operand.hbm [shape: f32[1,16], index: 9, kind: input, shape index: {}]   ;;  %s3333_s10 = inlined_call_operand.hbm [shape: f32[1,16], index: 10, kind: input, shape index: {}]   ;;  %s3334_s11 = inlined_call_operand.hbm [shape: bf16[16,128], index: 11, kind: input, shape index: {}]   ;;  %s3335_s12 = inlined_call_operand.hbm [shape: f32[1,128], index: 12, kind: input, shape index: {}]   ;;  %s3336_s13 = inlined_call_operand.hbm [shape: bf16[16,32], index: 13, kind: input, shape index: {}]   ;;  %s3337_s14 = inlined_call_operand.hbm [shape: f32[1,32], index: 14, kind: input, shape index: {}]   ;;  %s3338_s15 = inlined_call_operand.hbm [shape: f32[1,32], index: 15, kind: input, shape index: {}, may-alias: {15,17,23,25}]   ;;  %s3339_s16 = inlined_call_operand.hbm [shape: f32[1,32], index: 16, kind: input, shape index: {}, may-alias: {16,18,24,26}]   ;;  %s3340_s17 = inlined_call_operand.hbm [shape: f32[1,32], index: 17, kind: input, shape index: {}, may-alias: {15,17,23,25}]   ;;  %s3341_s18 = inlined_call_operand.hbm [shape: f32[1,32], index: 18, kind: input, shape index: {}, may-alias: {16,18,24,26}]   ;;  %s3342_s19 = inlined_call_operand.hbm [shape: bf16[32,128], index: 19, kind: input, shape index: {}]   ;;  %s3343_s20 = inlined_call_operand.hbm [shape: f32[1,128], index: 20, kind: input, shape index: {}]   ;;  %s3344_s21 = inlined_call_operand.hbm [shape: bf16[32,32], index: 21, kind: input, shape index: {}]   ;;  %s3345_s22 = inlined_call_operand.hbm [shape: f32[1,32], index: 22, kind: input, shape index: {}]   ;;  %s3346_s23 = inlined_call_operand.hbm [shape: f32[1,32], index: 23, kind: input, shape index: {}, may-alias: {15,17,23,25}]   ;;  %s3347_s24 = inlined_call_operand.hbm [shape: f32[1,32], index: 24, kind: input, shape index: {}, may-alias: {16,18,24,26}]   ;;  %s3348_s25 = inlined_call_operand.hbm [shape: f32[1,32], index: 25, kind: input, shape index: {}, may-alias: {15,17,23,25}]   ;;  %s3349_s26 = inlined_call_operand.hbm [shape: f32[1,32], index: 26, kind: input, shape index: {}, may-alias: {16,18,24,26}]   ;;  %s3350_s27 = inlined_call_operand.hbm [shape: f32[2,32], index: 27, kind: output, shape index: {}]  }
   0x1   :  { %3374 = sst [smem:[#allocation60_spill]] %s3323_s0 }
   0x2   :  { %3375 = sst [smem:[#allocation61_spill]] %s3324_s1 }
   0x3   :  { %3376 = sst [smem:[#allocation62_spill]] %s3325_s2 }
   0x4   :  { %3377 = sst [smem:[#allocation63_spill]] %s3326_s3 }
   0x5   :  { %3378 = sst [smem:[#allocation64_spill]] %s3327_s4 }
   0x6   :  { %3379 = sst [smem:[#allocation65_spill]] %s3328_s5 }
   0x7   :  { %3380 = sst [smem:[#allocation66_spill]] %s3329_s6 }
   0x8   :  { %3381 = sst [smem:[#allocation67_spill]] %s3330_s7 }
   0x9   :  { %3382 = sst [smem:[#allocation68_spill]] %s3331_s8 }
   0xa   :  { %3383 = sst [smem:[#allocation69_spill]] %s3332_s9 }
   0xb   :  { %3384 = sst [smem:[#allocation70_spill]] %s3333_s10 }
   0xc   :  { %3385 = sst [smem:[#allocation71_spill]] %s3334_s11 }
   0xd   :  { %3386 = sst [smem:[#allocation72_spill]] %s3347_s24 }
   0xe   :  { %3387 = sst [smem:[#allocation73_spill]] %s3349_s26 }
   0xf   :  { %3388 = sst [smem:[#allocation74_spill]] %s3350_s27 }
  0x10   :  { %32 = vsyncpa [#allocation3], 0 }
  0x11   :  { %33 = vsyncpa [#allocation6], 0 }
  0x12   :  { %34 = vsyncpa [#allocation9], 0 }
  0x13   :  { %35 = vsyncpa [#allocation12], 0 }
  0x14   :  { %36 = vsyncpa [#allocation15], 0 }
  0x15   :  { %37 = vsyncpa [#allocation18], 0 }
  0x16   :  { %38 = vsyncpa [#allocation21], 0 }
  0x17   :  { %39 = vsyncpa [#allocation24], 0 }
  0x18   :  { %40 = vsyncpa [#allocation27], 0 }
  0x19   :  { %41 = vsyncpa [#allocation30], 0 }
  0x1a   :  { %42 = vsyncpa [#allocation33], 0 }
  0x1b   :  { %43 = vsyncpa [#allocation36], 0 }
  0x1c   :  { %44 = vsyncpa [#allocation39], 0 }
  0x1d   :  { %45 = vsyncpa [#allocation42], 0 }
  0x1e   :  { %46 = vsyncpa [#allocation4], 0  ;;  %s2618_s7 = smov [#allocation5]   ;;  %s3389_s9 = sld [smem:[#allocation61_spill]] }
  0x1f   :  { %s64_s4 = sshll.u32 %s2618_s7, 4  ;;  %s65_s4 = int_to_ptr.vmem [resolvable:$true] %s64_s4 }
  0x24   :  { %s1972_s5 = scalar_lea.hbm %s3389_s9, 512 }
  0x25   :  { %p1973_p0 = scmp.ne.s32.totalorder %s3389_s9, %s1972_s5  ;;  %p1976_p1 = scmp.lt.u32.totalorder %s1972_s5, %s3389_s9 }
  0x27   :  { %p1978_p2 = pnand %p1976_p1, %p1973_p0 }
  0x29   :  { %1981 = shalt.err (!%p1978_p2)
}
  0x2a   :  { %s1982_s1 = scalar_lea.vmem %s65_s4, 512  ;;  %p1987_p4 = scmp.lt.s32.totalorder %s65_s4, %s65_s4 }
  0x2b   :  { %p1983_p3 = scmp.ne.s32.totalorder %s65_s4, %s1982_s1  ;;  %p1988_p5 = scmp.lt.s32.totalorder %s1982_s1, %s1982_s1 }
  0x2d   :  { %p1989_p6 = por %p1988_p5, %p1987_p4 }
  0x2f   :  { %p1990_p7 = pnand %p1989_p6, %p1983_p3 }
  0x31   :  { %1993 = shalt.err (!%p1990_p7)
}
  0x32   :  { %s3370_s6 = smov 128   ;;  %s3372_s11 = smov 8  }
  0x33   :  { %70 = dma.hbm_to_vmem [thread:$0]  %s3389_s9, 512, %s65_s4, [#allocation6], %s3370_s6, %s3370_s6, %s3372_s11  }
  0x34   :  { %s2621_s7 = smov [#allocation8]   ;;  %s2622_s30 = smov [#allocation11]  }
  0x35   :  { %s88_s8 = sshll.u32 %s2621_s7, 4  ;;  %s112_s5 = sshll.u32 %s2622_s30, 4  ;;  %s89_s8 = int_to_ptr.vmem [resolvable:$true] %s88_s8  ;;  %s113_s5 = int_to_ptr.vmem [resolvable:$true] %s112_s5 }
  0x36   :  { %s3390_s10 = sld [smem:[#allocation63_spill]] }
  0x3c   :  { %s1994_s29 = scalar_lea.hbm %s3390_s10, 256 }
  0x3d   :  { %p1995_p8 = scmp.ne.s32.totalorder %s3390_s10, %s1994_s29  ;;  %p1998_p9 = scmp.lt.u32.totalorder %s1994_s29, %s3390_s10 }
  0x3f   :  { %p2000_p10 = pnand %p1998_p9, %p1995_p8 }
  0x41   :  { %2003 = shalt.err (!%p2000_p10)
}
  0x42   :  { %s2004_s4 = scalar_lea.vmem %s89_s8, 256  ;;  %p2009_p12 = scmp.lt.s32.totalorder %s89_s8, %s89_s8 }
  0x43   :  { %p2005_p11 = scmp.ne.s32.totalorder %s89_s8, %s2004_s4  ;;  %p2010_p13 = scmp.lt.s32.totalorder %s2004_s4, %s2004_s4 }
  0x45   :  { %p2011_p0 = por %p2010_p13, %p2009_p12 }
  0x47   :  { %p2012_p1 = pnand %p2011_p0, %p2005_p11 }
  0x49   :  { %2015 = shalt.err (!%p2012_p1)
}
  0x4a   :  { %s3366_s9 = smov 64   ;;  %s3368_s2 = smov 4  }
  0x4b   :  { %94 = dma.hbm_to_vmem [thread:$0]  %s3390_s10, 256, %s89_s8, [#allocation9], %s3366_s9, %s3366_s9, %s3368_s2  }
  0x4c   :  { %s3391_s7 = sld [smem:[#allocation65_spill]] }
  0x52   :  { %s2016_s30 = scalar_lea.hbm %s3391_s7, 512 }
  0x53   :  { %p2017_p2 = scmp.ne.s32.totalorder %s3391_s7, %s2016_s30  ;;  %p2020_p3 = scmp.lt.u32.totalorder %s2016_s30, %s3391_s7 }
  0x55   :  { %p2022_p4 = pnand %p2020_p3, %p2017_p2 }
  0x57   :  { %2025 = shalt.err (!%p2022_p4)
}
  0x58   :  { %s2026_s4 = scalar_lea.vmem %s113_s5, 512  ;;  %p2031_p6 = scmp.lt.s32.totalorder %s113_s5, %s113_s5 }
  0x59   :  { %p2027_p5 = scmp.ne.s32.totalorder %s113_s5, %s2026_s4  ;;  %p2032_p7 = scmp.lt.s32.totalorder %s2026_s4, %s2026_s4 }
  0x5b   :  { %p2033_p8 = por %p2032_p7, %p2031_p6 }
  0x5d   :  { %p2034_p9 = pnand %p2033_p8, %p2027_p5 }
  0x5f   :  { %2037 = shalt.err (!%p2034_p9)
}
  0x60   :  { %118 = dma.hbm_to_vmem [thread:$0]  %s3391_s7, 512, %s113_s5, [#allocation12], %s3370_s6, %s3370_s6, %s3372_s11  }
  0x61   :  { %s2625_s27 = smov [#allocation14]   ;;  %s2626_s24 = smov [#allocation17]  }
  0x62   :  { %s134_s3 = sshll.u32 %s2625_s27, 4  ;;  %s157_s26 = sshll.u32 %s2626_s24, 4  ;;  %s135_s3 = int_to_ptr.vmem [resolvable:$true] %s134_s3  ;;  %s158_s26 = int_to_ptr.vmem [resolvable:$true] %s157_s26 }
  0x63   :  { %s3392_s0 = sld [smem:[#allocation67_spill]] }
  0x69   :  { %s2038_s29 = scalar_lea.hbm %s3392_s0, 128 }
  0x6a   :  { %p2039_p10 = scmp.ne.s32.totalorder %s3392_s0, %s2038_s29  ;;  %p2042_p11 = scmp.lt.u32.totalorder %s2038_s29, %s3392_s0 }
  0x6c   :  { %p2044_p12 = pnand %p2042_p11, %p2039_p10 }
  0x6e   :  { %2047 = shalt.err (!%p2044_p12)
}
  0x6f   :  { %s2048_s5 = scalar_lea.vmem %s135_s3, 128  ;;  %p2053_p0 = scmp.lt.s32.totalorder %s135_s3, %s135_s3 }
  0x70   :  { %p2049_p13 = scmp.ne.s32.totalorder %s135_s3, %s2048_s5  ;;  %p2054_p1 = scmp.lt.s32.totalorder %s2048_s5, %s2048_s5 }
  0x72   :  { %p2055_p2 = por %p2054_p1, %p2053_p0 }
  0x74   :  { %p2056_p3 = pnand %p2055_p2, %p2049_p13 }
  0x76   :  { %2059 = shalt.err (!%p2056_p3)
}
  0x77   :  { %s3393_s7 = smov 4   ;;  %s3394_s8 = smov 64  }
  0x78   :  { %140 = dma.hbm_to_vmem [thread:$0]  %s3392_s0, 128, %s135_s3, [#allocation15], %s3394_s8, %s3394_s8, %s3393_s7  }
  0x79   :  { %s3395_s2 = sld [smem:[#allocation69_spill]] }
  0x7f   :  { %s2060_s30 = scalar_lea.hbm %s3395_s2, 16 }
  0x80   :  { %p2061_p4 = scmp.ne.s32.totalorder %s3395_s2, %s2060_s30  ;;  %p2064_p5 = scmp.lt.u32.totalorder %s2060_s30, %s3395_s2 }
  0x82   :  { %p2066_p6 = pnand %p2064_p5, %p2061_p4 }
  0x84   :  { %2069 = shalt.err (!%p2066_p6)
}
  0x85   :  { %s2070_s5 = scalar_lea.vmem %s158_s26, 16  ;;  %s2074_s6 = scalar_lea.vmem %s158_s26, 32 }
  0x86   :  { %p2071_p7 = scmp.ne.s32.totalorder %s158_s26, %s2070_s5  ;;  %p2075_p8 = scmp.lt.s32.totalorder %s158_s26, %s158_s26 }
  0x87   :  { %p2076_p9 = scmp.lt.s32.totalorder %s2074_s6, %s2070_s5 }
  0x89   :  { %p2077_p10 = por %p2076_p9, %p2075_p8 }
  0x8b   :  { %p2078_p11 = pnand %p2077_p10, %p2071_p7 }
  0x8d   :  { %2081 = shalt.err (!%p2078_p11)
}
  0x8e   :  { %160 = dma.hbm_to_vmem [thread:$0]  %s3395_s2, 16, %s158_s26, [#allocation18]  }
  0x8f   :  { %s2627_s10 = smov [#allocation20]   ;;  %s2628_s24 = smov [#allocation23]  }
  0x90   :  { %s176_s27 = sshll.u32 %s2627_s10, 4  ;;  %s198_s9 = sshll.u32 %s2628_s24, 4  ;;  %s177_s27 = int_to_ptr.vmem [resolvable:$true] %s176_s27  ;;  %s199_s9 = int_to_ptr.vmem [resolvable:$true] %s198_s9 }
  0x91   :  { %s3396_s29 = sld [smem:[#allocation71_spill]] }
  0x97   :  { %s2082_s1 = scalar_lea.hbm %s3396_s29, 128 }
  0x98   :  { %p2083_p12 = scmp.ne.s32.totalorder %s3396_s29, %s2082_s1  ;;  %p2086_p13 = scmp.lt.u32.totalorder %s2082_s1, %s3396_s29 }
  0x9a   :  { %p2088_p0 = pnand %p2086_p13, %p2083_p12 }
  0x9c   :  { %2091 = shalt.err (!%p2088_p0)
}
  0x9d   :  { %s2092_s26 = scalar_lea.vmem %s177_s27, 128  ;;  %p2097_p2 = scmp.lt.s32.totalorder %s177_s27, %s177_s27 }
  0x9e   :  { %p2093_p1 = scmp.ne.s32.totalorder %s177_s27, %s2092_s26  ;;  %p2098_p3 = scmp.lt.s32.totalorder %s2092_s26, %s2092_s26 }
  0xa0   :  { %p2099_p4 = por %p2098_p3, %p2097_p2 }
  0xa2   :  { %p2100_p5 = pnand %p2099_p4, %p2093_p1 }
  0xa4   :  { %2103 = shalt.err (!%p2100_p5)
}
  0xa5   :  { %182 = dma.hbm_to_vmem [thread:$0]  %s3396_s29, 128, %s177_s27, [#allocation21], %s3394_s8, %s3394_s8, %s3393_s7  }
  0xa6   :  { %s2104_s10 = scalar_lea.hbm %s3336_s13, 128 }
  0xa7   :  { %p2105_p6 = scmp.ne.s32.totalorder %s3336_s13, %s2104_s10  ;;  %p2108_p7 = scmp.lt.u32.totalorder %s2104_s10, %s3336_s13 }
  0xa9   :  { %p2110_p8 = pnand %p2108_p7, %p2105_p6 }
  0xab   :  { %2113 = shalt.err (!%p2110_p8)
}
  0xac   :  { %s2114_s4 = scalar_lea.vmem %s199_s9, 128  ;;  %p2119_p10 = scmp.lt.s32.totalorder %s199_s9, %s199_s9 }
  0xad   :  { %p2115_p9 = scmp.ne.s32.totalorder %s199_s9, %s2114_s4  ;;  %p2120_p11 = scmp.lt.s32.totalorder %s2114_s4, %s2114_s4 }
  0xaf   :  { %p2121_p12 = por %p2120_p11, %p2119_p10 }
  0xb1   :  { %p2122_p13 = pnand %p2121_p12, %p2115_p9 }
  0xb3   :  { %2125 = shalt.err (!%p2122_p13)
}
  0xb4   :  { %204 = dma.hbm_to_vmem [thread:$0]  %s3336_s13, 128, %s199_s9, [#allocation24], %s3394_s8, %s3394_s8, %s3393_s7  }
  0xb5   :  { %s2629_s6 = smov [#allocation26]   ;;  %s2630_s26 = smov [#allocation29]  }
  0xb6   :  { %s221_s5 = sshll.u32 %s2629_s6, 4  ;;  %s241_s2 = sshll.u32 %s2630_s26, 4  ;;  %s222_s5 = int_to_ptr.vmem [resolvable:$true] %s221_s5  ;;  %s242_s2 = int_to_ptr.vmem [resolvable:$true] %s241_s2 }
  0xb7   :  { %s2126_s0 = scalar_lea.hbm %s3338_s15, 16 }
  0xb8   :  { %p2127_p0 = scmp.ne.s32.totalorder %s3338_s15, %s2126_s0  ;;  %p2130_p1 = scmp.lt.u32.totalorder %s2126_s0, %s3338_s15 }
  0xba   :  { %p2132_p2 = pnand %p2130_p1, %p2127_p0 }
  0xbc   :  { %2135 = shalt.err (!%p2132_p2)
}
  0xbd   :  { %s2136_s13 = scalar_lea.vmem %s222_s5, 16  ;;  %s2140_s9 = scalar_lea.vmem %s222_s5, 32 }
  0xbe   :  { %p2137_p3 = scmp.ne.s32.totalorder %s222_s5, %s2136_s13  ;;  %p2141_p4 = scmp.lt.s32.totalorder %s222_s5, %s222_s5 }
  0xbf   :  { %p2142_p5 = scmp.lt.s32.totalorder %s2140_s9, %s2136_s13 }
  0xc1   :  { %p2143_p6 = por %p2142_p5, %p2141_p4 }
  0xc3   :  { %p2144_p7 = pnand %p2143_p6, %p2137_p3 }
  0xc5   :  { %2147 = shalt.err (!%p2144_p7)
}
  0xc6   :  { %224 = dma.hbm_to_vmem [thread:$0]  %s3338_s15, 16, %s222_s5, [#allocation27]  }
  0xc7   :  { %s2148_s6 = scalar_lea.hbm %s3340_s17, 16 }
  0xc8   :  { %p2149_p8 = scmp.ne.s32.totalorder %s3340_s17, %s2148_s6  ;;  %p2152_p9 = scmp.lt.u32.totalorder %s2148_s6, %s3340_s17 }
  0xca   :  { %p2154_p10 = pnand %p2152_p9, %p2149_p8 }
  0xcc   :  { %2157 = shalt.err (!%p2154_p10)
}
  0xcd   :  { %s2158_s10 = scalar_lea.vmem %s242_s2, 16  ;;  %s2162_s24 = scalar_lea.vmem %s242_s2, 32 }
  0xce   :  { %p2159_p11 = scmp.ne.s32.totalorder %s242_s2, %s2158_s10  ;;  %p2163_p12 = scmp.lt.s32.totalorder %s242_s2, %s242_s2 }
  0xcf   :  { %p2164_p13 = scmp.lt.s32.totalorder %s2162_s24, %s2158_s10 }
  0xd1   :  { %p2165_p0 = por %p2164_p13, %p2163_p12 }
  0xd3   :  { %p2166_p1 = pnand %p2165_p0, %p2159_p11 }
  0xd5   :  { %2169 = shalt.err (!%p2166_p1)
}
  0xd6   :  { %244 = dma.hbm_to_vmem [thread:$0]  %s3340_s17, 16, %s242_s2, [#allocation30]  }
  0xd7   :  { %s2631_s30 = smov [#allocation32]   ;;  %s2632_s13 = smov [#allocation35]  }
  0xd8   :  { %s260_s28 = sshll.u32 %s2631_s30, 4  ;;  %s282_s9 = sshll.u32 %s2632_s13, 4  ;;  %s261_s28 = int_to_ptr.vmem [resolvable:$true] %s260_s28  ;;  %s283_s9 = int_to_ptr.vmem [resolvable:$true] %s282_s9 }
  0xd9   :  { %s2170_s27 = scalar_lea.hbm %s3342_s19, 256 }
  0xda   :  { %p2171_p2 = scmp.ne.s32.totalorder %s3342_s19, %s2170_s27  ;;  %p2174_p3 = scmp.lt.u32.totalorder %s2170_s27, %s3342_s19 }
  0xdc   :  { %p2176_p4 = pnand %p2174_p3, %p2171_p2 }
  0xde   :  { %2179 = shalt.err (!%p2176_p4)
}
  0xdf   :  { %s2180_s17 = scalar_lea.vmem %s261_s28, 256  ;;  %p2185_p6 = scmp.lt.s32.totalorder %s261_s28, %s261_s28 }
  0xe0   :  { %p2181_p5 = scmp.ne.s32.totalorder %s261_s28, %s2180_s17  ;;  %p2186_p7 = scmp.lt.s32.totalorder %s2180_s17, %s2180_s17 }
  0xe2   :  { %p2187_p8 = por %p2186_p7, %p2185_p6 }
  0xe4   :  { %p2188_p9 = pnand %p2187_p8, %p2181_p5 }
  0xe6   :  { %2191 = shalt.err (!%p2188_p9)
}
  0xe7   :  { %266 = dma.hbm_to_vmem [thread:$0]  %s3342_s19, 256, %s261_s28, [#allocation33], %s3394_s8, %s3394_s8, %s3393_s7  }
  0xe8   :  { %s2192_s24 = scalar_lea.hbm %s3344_s21, 256 }
  0xe9   :  { %p2193_p10 = scmp.ne.s32.totalorder %s3344_s21, %s2192_s24  ;;  %p2196_p11 = scmp.lt.u32.totalorder %s2192_s24, %s3344_s21 }
  0xeb   :  { %p2198_p12 = pnand %p2196_p11, %p2193_p10 }
  0xed   :  { %2201 = shalt.err (!%p2198_p12)
}
  0xee   :  { %s2202_s1 = scalar_lea.vmem %s283_s9, 256  ;;  %p2207_p0 = scmp.lt.s32.totalorder %s283_s9, %s283_s9 }
  0xef   :  { %p2203_p13 = scmp.ne.s32.totalorder %s283_s9, %s2202_s1  ;;  %p2208_p1 = scmp.lt.s32.totalorder %s2202_s1, %s2202_s1 }
  0xf1   :  { %p2209_p2 = por %p2208_p1, %p2207_p0 }
  0xf3   :  { %p2210_p3 = pnand %p2209_p2, %p2203_p13 }
  0xf5   :  { %2213 = shalt.err (!%p2210_p3)
}
  0xf6   :  { %288 = dma.hbm_to_vmem [thread:$0]  %s3344_s21, 256, %s283_s9, [#allocation36], %s3394_s8, %s3394_s8, %s3393_s7  }
  0xf7   :  { %s2633_s4 = smov [#allocation38]   ;;  %s2634_s29 = smov [#allocation41]  }
  0xf8   :  { %s305_s27 = sshll.u32 %s2633_s4, 4  ;;  %s325_s6 = sshll.u32 %s2634_s29, 4  ;;  %s306_s27 = int_to_ptr.vmem [resolvable:$true] %s305_s27  ;;  %s326_s6 = int_to_ptr.vmem [resolvable:$true] %s325_s6 }
  0xf9   :  { %s2214_s17 = scalar_lea.hbm %s3346_s23, 16 }
  0xfa   :  { %p2215_p4 = scmp.ne.s32.totalorder %s3346_s23, %s2214_s17  ;;  %p2218_p5 = scmp.lt.u32.totalorder %s2214_s17, %s3346_s23 }
  0xfc   :  { %p2220_p6 = pnand %p2218_p5, %p2215_p4 }
  0xfe   :  { %2223 = shalt.err (!%p2220_p6)
}
  0xff   :  { %s2224_s21 = scalar_lea.vmem %s306_s27, 16  ;;  %s2228_s9 = scalar_lea.vmem %s306_s27, 32 }
 0x100   :  { %p2225_p7 = scmp.ne.s32.totalorder %s306_s27, %s2224_s21  ;;  %p2229_p8 = scmp.lt.s32.totalorder %s306_s27, %s306_s27 }
 0x101   :  { %p2230_p9 = scmp.lt.s32.totalorder %s2228_s9, %s2224_s21 }
 0x103   :  { %p2231_p10 = por %p2230_p9, %p2229_p8 }
 0x105   :  { %p2232_p11 = pnand %p2231_p10, %p2225_p7 }
 0x107   :  { %2235 = shalt.err (!%p2232_p11)
}
 0x108   :  { %308 = dma.hbm_to_vmem [thread:$0]  %s3346_s23, 16, %s306_s27, [#allocation39]  }
 0x109   :  { %s2236_s13 = scalar_lea.hbm %s3348_s25, 16 }
 0x10a   :  { %p2237_p12 = scmp.ne.s32.totalorder %s3348_s25, %s2236_s13  ;;  %p2240_p13 = scmp.lt.u32.totalorder %s2236_s13, %s3348_s25 }
 0x10c   :  { %p2242_p0 = pnand %p2240_p13, %p2237_p12 }
 0x10e   :  { %2245 = shalt.err (!%p2242_p0)
}
 0x10f   :  { %s2246_s29 = scalar_lea.vmem %s326_s6, 16  ;;  %s2250_s26 = scalar_lea.vmem %s326_s6, 32 }
 0x110   :  { %p2247_p1 = scmp.ne.s32.totalorder %s326_s6, %s2246_s29  ;;  %p2251_p2 = scmp.lt.s32.totalorder %s326_s6, %s326_s6 }
 0x111   :  { %p2252_p3 = scmp.lt.s32.totalorder %s2250_s26, %s2246_s29 }
 0x113   :  { %p2253_p4 = por %p2252_p3, %p2251_p2 }
 0x115   :  { %p2254_p5 = pnand %p2253_p4, %p2247_p1 }
 0x117   :  { %2257 = shalt.err (!%p2254_p5)
}
 0x118   :  { %328 = dma.hbm_to_vmem [thread:$0]  %s3348_s25, 16, %s326_s6, [#allocation42]  }
 0x119   :  { %s2635_s3 = smov [#allocation2]   ;;  %s2636_s2 = smov [#allocation7]  }
 0x11a   :  { %s52_s17 = sshll.u32 %s2635_s3, 4  ;;  %s76_s11 = sshll.u32 %s2636_s2, 4  ;;  %s53_s17 = int_to_ptr.vmem [resolvable:$true] %s52_s17  ;;  %s77_s11 = int_to_ptr.vmem [resolvable:$true] %s76_s11 }
 0x11b   :  { %s3397_s21 = sld [smem:[#allocation60_spill]] }
 0x121   :  { %s2258_s9 = scalar_lea.hbm %s3397_s21, 256 }
 0x122   :  { %p2259_p6 = scmp.ne.s32.totalorder %s3397_s21, %s2258_s9  ;;  %p2262_p7 = scmp.lt.u32.totalorder %s2258_s9, %s3397_s21 }
 0x124   :  { %p2264_p8 = pnand %p2262_p7, %p2259_p6 }
 0x126   :  { %2267 = shalt.err (!%p2264_p8)
}
 0x127   :  { %s2268_s25 = scalar_lea.vmem %s53_s17, 256  ;;  %p2273_p10 = scmp.lt.s32.totalorder %s53_s17, %s53_s17 }
 0x128   :  { %p2269_p9 = scmp.ne.s32.totalorder %s53_s17, %s2268_s25  ;;  %p2274_p11 = scmp.lt.s32.totalorder %s2268_s25, %s2268_s25 }
 0x12a   :  { %p2275_p12 = por %p2274_p11, %p2273_p10 }
 0x12c   :  { %p2276_p13 = pnand %p2275_p12, %p2269_p9 }
 0x12e   :  { %2279 = shalt.err (!%p2276_p13)
}
 0x12f   :  { %s3398_s6 = smov 8   ;;  %s3399_s13 = smov 128  }
 0x130   :  { %58 = dma.hbm_to_vmem [thread:$0]  %s3397_s21, 256, %s53_s17, [#allocation3], %s3399_s13, %s3399_s13, %s3398_s6  }
 0x131   :  { %s3400_s29 = sld [smem:[#allocation62_spill]] }
 0x137   :  { %s2280_s26 = scalar_lea.hbm %s3400_s29, 256 }
 0x138   :  { %p2281_p0 = scmp.ne.s32.totalorder %s3400_s29, %s2280_s26  ;;  %p2284_p1 = scmp.lt.u32.totalorder %s2280_s26, %s3400_s29 }
 0x13a   :  { %p2286_p2 = pnand %p2284_p1, %p2281_p0 }
 0x13c   :  { %2289 = shalt.err (!%p2286_p2)
}
 0x13d   :  { %s2290_s0 = scalar_lea.vmem %s77_s11, 256  ;;  %p2295_p4 = scmp.lt.s32.totalorder %s77_s11, %s77_s11 }
 0x13e   :  { %p2291_p3 = scmp.ne.s32.totalorder %s77_s11, %s2290_s0  ;;  %p2296_p5 = scmp.lt.s32.totalorder %s2290_s0, %s2290_s0 }
 0x140   :  { %p2297_p6 = por %p2296_p5, %p2295_p4 }
 0x142   :  { %p2298_p7 = pnand %p2297_p6, %p2291_p3 }
 0x144   :  { %2301 = shalt.err (!%p2298_p7)
}
 0x145   :  { %82 = dma.hbm_to_vmem [thread:$0]  %s3400_s29, 256, %s77_s11, [#allocation6], %s3394_s8, %s3394_s8, %s3393_s7  }
 0x146   :  { %s2637_s21 = smov [#allocation10]   ;;  %s2638_s24 = smov [#allocation13]  }
 0x147   :  { %s100_s9 = sshll.u32 %s2637_s21, 4  ;;  %s125_s15 = sshll.u32 %s2638_s24, 4  ;;  %s101_s9 = int_to_ptr.vmem [resolvable:$true] %s100_s9  ;;  %s126_s15 = int_to_ptr.vmem [resolvable:$true] %s125_s15 }
 0x148   :  { %s3401_s25 = sld [smem:[#allocation64_spill]] }
 0x14e   :  { %s2302_s1 = scalar_lea.hbm %s3401_s25, 256 }
 0x14f   :  { %p2303_p8 = scmp.ne.s32.totalorder %s3401_s25, %s2302_s1  ;;  %p2306_p9 = scmp.lt.u32.totalorder %s2302_s1, %s3401_s25 }
 0x151   :  { %p2308_p10 = pnand %p2306_p9, %p2303_p8 }
 0x153   :  { %2311 = shalt.err (!%p2308_p10)
}
 0x154   :  { %s2312_s7 = scalar_lea.vmem %s101_s9, 256  ;;  %p2317_p12 = scmp.lt.s32.totalorder %s101_s9, %s101_s9 }
 0x155   :  { %p2313_p11 = scmp.ne.s32.totalorder %s101_s9, %s2312_s7  ;;  %p2318_p13 = scmp.lt.s32.totalorder %s2312_s7, %s2312_s7 }
 0x157   :  { %p2319_p0 = por %p2318_p13, %p2317_p12 }
 0x159   :  { %p2320_p1 = pnand %p2319_p0, %p2313_p11 }
 0x15b   :  { %2323 = shalt.err (!%p2320_p1)
}
 0x15c   :  { %106 = dma.hbm_to_vmem [thread:$0]  %s3401_s25, 256, %s101_s9, [#allocation9], %s3399_s13, %s3399_s13, %s3398_s6  }
 0x15d   :  { %s3402_s27 = sld [smem:[#allocation66_spill]] }
 0x163   :  { %s2324_s3 = scalar_lea.hbm %s3402_s27, 32 }
 0x164   :  { %p2325_p2 = scmp.ne.s32.totalorder %s3402_s27, %s2324_s3  ;;  %p2328_p3 = scmp.lt.u32.totalorder %s2324_s3, %s3402_s27 }
 0x166   :  { %p2330_p4 = pnand %p2328_p3, %p2325_p2 }
 0x168   :  { %2333 = shalt.err (!%p2330_p4)
}
 0x169   :  { %s2334_s21 = scalar_lea.vmem %s126_s15, 32  ;;  %p2339_p6 = scmp.lt.s32.totalorder %s126_s15, %s126_s15 }
 0x16a   :  { %p2335_p5 = scmp.ne.s32.totalorder %s126_s15, %s2334_s21  ;;  %p2340_p7 = scmp.lt.s32.totalorder %s2334_s21, %s2334_s21 }
 0x16c   :  { %p2341_p8 = por %p2340_p7, %p2339_p6 }
 0x16e   :  { %p2342_p9 = pnand %p2341_p8, %p2335_p5 }
 0x170   :  { %2345 = shalt.err (!%p2342_p9)
}
 0x171   :  { %128 = dma.hbm_to_vmem [thread:$0]  %s3402_s27, 32, %s126_s15, [#allocation12]  }
 0x172   :  { %s2639_s9 = smov [#allocation16]   ;;  %s2640_s5 = smov [#allocation19]  }
 0x173   :  { %s147_s24 = sshll.u32 %s2639_s9, 4  ;;  %s167_s30 = sshll.u32 %s2640_s5, 4  ;;  %s148_s24 = int_to_ptr.vmem [resolvable:$true] %s147_s24  ;;  %s168_s30 = int_to_ptr.vmem [resolvable:$true] %s167_s30 }
 0x174   :  { %s3403_s19 = sld [smem:[#allocation68_spill]] }
 0x17a   :  { %s2346_s28 = scalar_lea.hbm %s3403_s19, 16 }
 0x17b   :  { %p2347_p10 = scmp.ne.s32.totalorder %s3403_s19, %s2346_s28  ;;  %p2350_p11 = scmp.lt.u32.totalorder %s2346_s28, %s3403_s19 }
 0x17d   :  { %p2352_p12 = pnand %p2350_p11, %p2347_p10 }
 0x17f   :  { %2355 = shalt.err (!%p2352_p12)
}
 0x180   :  { %s2356_s15 = scalar_lea.vmem %s148_s24, 16  ;;  %s2360_s11 = scalar_lea.vmem %s148_s24, 32 }
 0x181   :  { %p2357_p13 = scmp.ne.s32.totalorder %s148_s24, %s2356_s15  ;;  %p2361_p0 = scmp.lt.s32.totalorder %s148_s24, %s148_s24 }
 0x182   :  { %p2362_p1 = scmp.lt.s32.totalorder %s2360_s11, %s2356_s15 }
 0x184   :  { %p2363_p2 = por %p2362_p1, %p2361_p0 }
 0x186   :  { %p2364_p3 = pnand %p2363_p2, %p2357_p13 }
 0x188   :  { %2367 = shalt.err (!%p2364_p3)
}
 0x189   :  { %150 = dma.hbm_to_vmem [thread:$0]  %s3403_s19, 16, %s148_s24, [#allocation15]  }
 0x18a   :  { %s3404_s2 = sld [smem:[#allocation70_spill]] }
 0x190   :  { %s2368_s0 = scalar_lea.hbm %s3404_s2, 16 }
 0x191   :  { %p2369_p4 = scmp.ne.s32.totalorder %s3404_s2, %s2368_s0  ;;  %p2372_p5 = scmp.lt.u32.totalorder %s2368_s0, %s3404_s2 }
 0x193   :  { %p2374_p6 = pnand %p2372_p5, %p2369_p4 }
 0x195   :  { %2377 = shalt.err (!%p2374_p6)
}
 0x196   :  { %s2378_s13 = scalar_lea.vmem %s168_s30, 16  ;;  %s2382_s9 = scalar_lea.vmem %s168_s30, 32 }
 0x197   :  { %p2379_p7 = scmp.ne.s32.totalorder %s168_s30, %s2378_s13  ;;  %p2383_p8 = scmp.lt.s32.totalorder %s168_s30, %s168_s30 }
 0x198   :  { %p2384_p9 = scmp.lt.s32.totalorder %s2382_s9, %s2378_s13 }
 0x19a   :  { %p2385_p10 = por %p2384_p9, %p2383_p8 }
 0x19c   :  { %p2386_p11 = pnand %p2385_p10, %p2379_p7 }
 0x19e   :  { %2389 = shalt.err (!%p2386_p11)
}
 0x19f   :  { %170 = dma.hbm_to_vmem [thread:$0]  %s3404_s2, 16, %s168_s30, [#allocation18]  }
 0x1a0   :  { %s2641_s25 = smov [#allocation22]   ;;  %s2642_s19 = smov [#allocation25]  }
 0x1a1   :  { %s189_s1 = sshll.u32 %s2641_s25, 4  ;;  %s211_s28 = sshll.u32 %s2642_s19, 4  ;;  %s190_s1 = int_to_ptr.vmem [resolvable:$true] %s189_s1  ;;  %s212_s28 = int_to_ptr.vmem [resolvable:$true] %s211_s28 }
 0x1a2   :  { %s2390_s7 = scalar_lea.hbm %s3335_s12, 16 }
 0x1a3   :  { %p2391_p12 = scmp.ne.s32.totalorder %s3335_s12, %s2390_s7  ;;  %p2394_p13 = scmp.lt.u32.totalorder %s2390_s7, %s3335_s12 }
 0x1a5   :  { %p2396_p0 = pnand %p2394_p13, %p2391_p12 }
 0x1a7   :  { %2399 = shalt.err (!%p2396_p0)
}
 0x1a8   :  { %s2400_s30 = scalar_lea.vmem %s190_s1, 16  ;;  %s2404_s23 = scalar_lea.vmem %s190_s1, 32 }
 0x1a9   :  { %p2401_p1 = scmp.ne.s32.totalorder %s190_s1, %s2400_s30  ;;  %p2405_p2 = scmp.lt.s32.totalorder %s190_s1, %s190_s1 }
 0x1aa   :  { %p2406_p3 = scmp.lt.s32.totalorder %s2404_s23, %s2400_s30 }
 0x1ac   :  { %p2407_p4 = por %p2406_p3, %p2405_p2 }
 0x1ae   :  { %p2408_p5 = pnand %p2407_p4, %p2401_p1 }
 0x1b0   :  { %2411 = shalt.err (!%p2408_p5)
}
 0x1b1   :  { %192 = dma.hbm_to_vmem [thread:$0]  %s3335_s12, 16, %s190_s1, [#allocation21]  }
 0x1b2   :  { %s2412_s17 = scalar_lea.hbm %s3337_s14, 16 }
 0x1b3   :  { %p2413_p6 = scmp.ne.s32.totalorder %s3337_s14, %s2412_s17  ;;  %p2416_p7 = scmp.lt.u32.totalorder %s2412_s17, %s3337_s14 }
 0x1b5   :  { %p2418_p8 = pnand %p2416_p7, %p2413_p6 }
 0x1b7   :  { %2421 = shalt.err (!%p2418_p8)
}
 0x1b8   :  { %s2422_s9 = scalar_lea.vmem %s212_s28, 16  ;;  %s2426_s24 = scalar_lea.vmem %s212_s28, 32 }
 0x1b9   :  { %p2423_p9 = scmp.ne.s32.totalorder %s212_s28, %s2422_s9  ;;  %p2427_p10 = scmp.lt.s32.totalorder %s212_s28, %s212_s28 }
 0x1ba   :  { %p2428_p11 = scmp.lt.s32.totalorder %s2426_s24, %s2422_s9 }
 0x1bc   :  { %p2429_p12 = por %p2428_p11, %p2427_p10 }
 0x1be   :  { %p2430_p13 = pnand %p2429_p12, %p2423_p9 }
 0x1c0   :  { %2433 = shalt.err (!%p2430_p13)
}
 0x1c1   :  { %214 = dma.hbm_to_vmem [thread:$0]  %s3337_s14, 16, %s212_s28, [#allocation24]  }
 0x1c2   :  { %s2643_s25 = smov [#allocation28]   ;;  %s2644_s19 = smov [#allocation31]  }
 0x1c3   :  { %s231_s1 = sshll.u32 %s2643_s25, 4  ;;  %s251_s4 = sshll.u32 %s2644_s19, 4  ;;  %s232_s1 = int_to_ptr.vmem [resolvable:$true] %s231_s1  ;;  %s252_s4 = int_to_ptr.vmem [resolvable:$true] %s251_s4 }
 0x1c4   :  { %s2434_s8 = scalar_lea.hbm %s3339_s16, 16 }
 0x1c5   :  { %p2435_p0 = scmp.ne.s32.totalorder %s3339_s16, %s2434_s8  ;;  %p2438_p1 = scmp.lt.u32.totalorder %s2434_s8, %s3339_s16 }
 0x1c7   :  { %p2440_p2 = pnand %p2438_p1, %p2435_p0 }
 0x1c9   :  { %2443 = shalt.err (!%p2440_p2)
}
 0x1ca   :  { %s2444_s14 = scalar_lea.vmem %s232_s1, 16  ;;  %s2448_s28 = scalar_lea.vmem %s232_s1, 32 }
 0x1cb   :  { %p2445_p3 = scmp.ne.s32.totalorder %s232_s1, %s2444_s14  ;;  %p2449_p4 = scmp.lt.s32.totalorder %s232_s1, %s232_s1 }
 0x1cc   :  { %p2450_p5 = scmp.lt.s32.totalorder %s2448_s28, %s2444_s14 }
 0x1ce   :  { %p2451_p6 = por %p2450_p5, %p2449_p4 }
 0x1d0   :  { %p2452_p7 = pnand %p2451_p6, %p2445_p3 }
 0x1d2   :  { %2455 = shalt.err (!%p2452_p7)
}
 0x1d3   :  { %234 = dma.hbm_to_vmem [thread:$0]  %s3339_s16, 16, %s232_s1, [#allocation27]  }
 0x1d4   :  { %s2456_s0 = scalar_lea.hbm %s3341_s18, 16 }
 0x1d5   :  { %p2457_p8 = scmp.ne.s32.totalorder %s3341_s18, %s2456_s0  ;;  %p2460_p9 = scmp.lt.u32.totalorder %s2456_s0, %s3341_s18 }
 0x1d7   :  { %p2462_p10 = pnand %p2460_p9, %p2457_p8 }
 0x1d9   :  { %2465 = shalt.err (!%p2462_p10)
}
 0x1da   :  { %s2466_s13 = scalar_lea.vmem %s252_s4, 16  ;;  %s2470_s9 = scalar_lea.vmem %s252_s4, 32 }
 0x1db   :  { %p2467_p11 = scmp.ne.s32.totalorder %s252_s4, %s2466_s13  ;;  %p2471_p12 = scmp.lt.s32.totalorder %s252_s4, %s252_s4 }
 0x1dc   :  { %p2472_p13 = scmp.lt.s32.totalorder %s2470_s9, %s2466_s13 }
 0x1de   :  { %p2473_p0 = por %p2472_p13, %p2471_p12 }
 0x1e0   :  { %p2474_p1 = pnand %p2473_p0, %p2467_p11 }
 0x1e2   :  { %2477 = shalt.err (!%p2474_p1)
}
 0x1e3   :  { %254 = dma.hbm_to_vmem [thread:$0]  %s3341_s18, 16, %s252_s4, [#allocation30]  }
 0x1e4   :  { %s2645_s12 = smov [#allocation34]   ;;  %s2646_s25 = smov [#allocation37]  }
 0x1e5   :  { %s273_s5 = sshll.u32 %s2645_s12, 4  ;;  %s295_s1 = sshll.u32 %s2646_s25, 4  ;;  %s274_s5 = int_to_ptr.vmem [resolvable:$true] %s273_s5  ;;  %s296_s1 = int_to_ptr.vmem [resolvable:$true] %s295_s1 }
 0x1e6   :  { %s2478_s7 = scalar_lea.hbm %s3343_s20, 16 }
 0x1e7   :  { %p2479_p2 = scmp.ne.s32.totalorder %s3343_s20, %s2478_s7  ;;  %p2482_p3 = scmp.lt.u32.totalorder %s2478_s7, %s3343_s20 }
 0x1e9   :  { %p2484_p4 = pnand %p2482_p3, %p2479_p2 }
 0x1eb   :  { %2487 = shalt.err (!%p2484_p4)
}
 0x1ec   :  { %s2488_s18 = scalar_lea.vmem %s274_s5, 16  ;;  %s2492_s4 = scalar_lea.vmem %s274_s5, 32 }
 0x1ed   :  { %p2489_p5 = scmp.ne.s32.totalorder %s274_s5, %s2488_s18  ;;  %p2493_p6 = scmp.lt.s32.totalorder %s274_s5, %s274_s5 }
 0x1ee   :  { %p2494_p7 = scmp.lt.s32.totalorder %s2492_s4, %s2488_s18 }
 0x1f0   :  { %p2495_p8 = por %p2494_p7, %p2493_p6 }
 0x1f2   :  { %p2496_p9 = pnand %p2495_p8, %p2489_p5 }
 0x1f4   :  { %2499 = shalt.err (!%p2496_p9)
}
 0x1f5   :  { %276 = dma.hbm_to_vmem [thread:$0]  %s3343_s20, 16, %s274_s5, [#allocation33]  }
 0x1f6   :  { %s2500_s27 = scalar_lea.hbm %s3345_s22, 16 }
 0x1f7   :  { %p2501_p10 = scmp.ne.s32.totalorder %s3345_s22, %s2500_s27  ;;  %p2504_p11 = scmp.lt.u32.totalorder %s2500_s27, %s3345_s22 }
 0x1f9   :  { %p2506_p12 = pnand %p2504_p11, %p2501_p10 }
 0x1fb   :  { %2509 = shalt.err (!%p2506_p12)
}
 0x1fc   :  { %s2510_s10 = scalar_lea.vmem %s296_s1, 16  ;;  %s2514_s21 = scalar_lea.vmem %s296_s1, 32 }
 0x1fd   :  { %p2511_p13 = scmp.ne.s32.totalorder %s296_s1, %s2510_s10  ;;  %p2515_p0 = scmp.lt.s32.totalorder %s296_s1, %s296_s1 }
 0x1fe   :  { %p2516_p1 = scmp.lt.s32.totalorder %s2514_s21, %s2510_s10 }
 0x200   :  { %p2517_p2 = por %p2516_p1, %p2515_p0 }
 0x202   :  { %p2518_p3 = pnand %p2517_p2, %p2511_p13 }
 0x204   :  { %2521 = shalt.err (!%p2518_p3)
}
 0x205   :  { %298 = dma.hbm_to_vmem [thread:$0]  %s3345_s22, 16, %s296_s1, [#allocation36]  }
 0x206   :  { %s2647_s13 = smov [#allocation40]   ;;  %s2648_s16 = smov [#allocation43]  }
 0x207   :  { %s315_s9 = sshll.u32 %s2647_s13, 4  ;;  %s335_s24 = sshll.u32 %s2648_s16, 4  ;;  %s316_s9 = int_to_ptr.vmem [resolvable:$true] %s315_s9  ;;  %s336_s24 = int_to_ptr.vmem [resolvable:$true] %s335_s24 }
 0x208   :  { %s3405_s25 = sld [smem:[#allocation72_spill]] }
 0x20e   :  { %s2522_s19 = scalar_lea.hbm %s3405_s25, 16 }
 0x20f   :  { %p2523_p4 = scmp.ne.s32.totalorder %s3405_s25, %s2522_s19  ;;  %p2526_p5 = scmp.lt.u32.totalorder %s2522_s19, %s3405_s25 }
 0x211   :  { %p2528_p6 = pnand %p2526_p5, %p2523_p4 }
 0x213   :  { %2531 = shalt.err (!%p2528_p6)
}
 0x214   :  { %s2532_s22 = scalar_lea.vmem %s316_s9, 16  ;;  %s2536_s1 = scalar_lea.vmem %s316_s9, 32 }
 0x215   :  { %p2533_p7 = scmp.ne.s32.totalorder %s316_s9, %s2532_s22  ;;  %p2537_p8 = scmp.lt.s32.totalorder %s316_s9, %s316_s9 }
 0x216   :  { %p2538_p9 = scmp.lt.s32.totalorder %s2536_s1, %s2532_s22 }
 0x218   :  { %p2539_p10 = por %p2538_p9, %p2537_p8 }
 0x21a   :  { %p2540_p11 = pnand %p2539_p10, %p2533_p7 }
 0x21c   :  { %2543 = shalt.err (!%p2540_p11)
}
 0x21d   :  { %318 = dma.hbm_to_vmem [thread:$0]  %s3405_s25, 16, %s316_s9, [#allocation39]  }
 0x21e   :  { %s3406_s30 = sld [smem:[#allocation73_spill]] }
 0x224   :  { %s2544_s14 = scalar_lea.hbm %s3406_s30, 16 }
 0x225   :  { %p2545_p12 = scmp.ne.s32.totalorder %s3406_s30, %s2544_s14  ;;  %p2548_p13 = scmp.lt.u32.totalorder %s2544_s14, %s3406_s30 }
 0x227   :  { %p2550_p0 = pnand %p2548_p13, %p2545_p12 }
 0x229   :  { %2553 = shalt.err (!%p2550_p0)
}
 0x22a   :  { %s2554_s2 = scalar_lea.vmem %s336_s24, 16  ;;  %s2558_s0 = scalar_lea.vmem %s336_s24, 32 }
 0x22b   :  { %p2555_p1 = scmp.ne.s32.totalorder %s336_s24, %s2554_s2  ;;  %p2559_p2 = scmp.lt.s32.totalorder %s336_s24, %s336_s24 }
 0x22c   :  { %p2560_p3 = scmp.lt.s32.totalorder %s2558_s0, %s2554_s2 }
 0x22e   :  { %p2561_p4 = por %p2560_p3, %p2559_p2 }
 0x230   :  { %p2562_p5 = pnand %p2561_p4, %p2555_p1 }
 0x232   :  { %2565 = shalt.err (!%p2562_p5)
}
 0x233   :  { %338 = dma.hbm_to_vmem [thread:$0]  %s3406_s30, 16, %s336_s24, [#allocation42]  }
 0x234   :  { %2588 = dma.done.wait [#allocation3], 256  }
 0x235   :  { %2589 = vsyncadd [#allocation3], 4294967040 }
 0x236   :  { %2590 = dma.done.wait [#allocation6], 768  }
 0x237   :  { %2591 = vsyncadd [#allocation6], 4294966528 }
 0x238   :  { %2592 = dma.done.wait [#allocation9], 512  }
 0x239   :  { %2593 = vsyncadd [#allocation9], 4294966784 }
 0x23a   :  { %2594 = dma.done.wait [#allocation12], 544  }
 0x23b   :  { %2595 = vsyncadd [#allocation12], 4294966752 }
 0x23c   :  { %2596 = dma.done.wait [#allocation15], 144  }
 0x23d   :  { %2597 = vsyncadd [#allocation15], 4294967152 }
 0x23e   :  { %2598 = dma.done.wait [#allocation18], 32  }
 0x23f   :  { %2599 = vsyncadd [#allocation18], 4294967264 }
 0x240   :  { %2600 = dma.done.wait [#allocation21], 144  }
 0x241   :  { %2601 = vsyncadd [#allocation21], 4294967152 }
 0x242   :  { %2602 = dma.done.wait [#allocation24], 144  }
 0x243   :  { %2603 = vsyncadd [#allocation24], 4294967152 }
 0x244   :  { %2604 = dma.done.wait [#allocation27], 32  }
 0x245   :  { %2605 = vsyncadd [#allocation27], 4294967264 }
 0x246   :  { %2606 = dma.done.wait [#allocation30], 32  }
 0x247   :  { %2607 = vsyncadd [#allocation30], 4294967264 }
 0x248   :  { %2608 = dma.done.wait [#allocation33], 272  }
 0x249   :  { %2609 = vsyncadd [#allocation33], 4294967024 }
 0x24a   :  { %2610 = dma.done.wait [#allocation36], 272  }
 0x24b   :  { %2611 = vsyncadd [#allocation36], 4294967024 }
 0x24c   :  { %2612 = dma.done.wait [#allocation39], 32  }
 0x24d   :  { %2613 = vsyncadd [#allocation39], 4294967264 }
 0x24e   :  { %2614 = dma.done.wait [#allocation42], 32  }
 0x24f   :  { %2615 = vsyncadd [#allocation42], 4294967264  ;;  %v2649_v0 = vmov 0.0   ;;  %vm2650_vm0 = vmmov 0   ;;  %v1915_v1 = vld [vmem:[#allocation14] sm:$0xff]   ;;  %vm453_vm1 = vcmask 130048  }
 0x250   :  { %1747 = vmatprep.subr.bf16.mxu0 %v2649_v0  ;;  %1749 = vmatprep.mubr.msk.bf16.mxu0 %vm2650_vm0, %v2649_v0  ;;  %v435_v2 = vld [vmem:[#allocation2] sm:$0xff]  ;;  %v436_v3 = vld [vmem:[#allocation2 + $0x8] sm:$0xff]  ;;  %v1916_v5 = vld [vmem:[#allocation20] sm:$0xff]   ;;  %v2651_v14 = vmov 0   ;;  %s2652_s21 = smov 96   ;;  %s2653_s20 = smov 32  }
 0x251   :  { %1753 = vmatprep.subr.bf16.mxu1 %v2649_v0  ;;  %1755 = vmatprep.mubr.msk.bf16.mxu1 %vm2650_vm0, %v2649_v0  ;;  %v437_v4 = vpack.c.bf16 %v436_v3, %v435_v2  ;;  %v1662_v6 = vld [vmem:[#allocation16] ss:$0 sm:$0xff]  ;;  %v499_v15 = vld [vmem:[#allocation5 + $0x8] sm:$0xff]  ;;  %v500_v16 = vld [vmem:[#allocation5 + $0x10] sm:$0xff]  ;;  %vm882_vm2 = vcmask 261120   ;;  %s2655_s6 = smov [#allocation44]  }
 0x252   :  { %1748 = vmatpush3.bf16.msra.mxu0 %v1915_v1  ;;  %1754 = vmatpush3.bf16.msra.mxu1 %v1916_v5  ;;  %v501_v17 = vld [vmem:[#allocation5 + $0x18] sm:$0xff]  ;;  %v3161_v18 = vld [vmem:[#allocation7] sm:$0xff]   ;;  %v1667_v19 = vld [vmem:[#allocation22] ss:$0 sm:$0xff]  ;;  %s1640_s13 = sshll.u32 %s2655_s6, 4  ;;  %vm1632_vm3 = vcmask 254976   ;;  %s1641_s13 = int_to_ptr.vmem [resolvable:$true] %s1640_s13 }
 0x253   :  { %1894 = vset.pattern.permute.xlu1 %v2651_v14  ;;  %1893 = vset.pattern.permute.xlu0 %v2651_v14  ;;  %v498_v27 = vld [vmem:[#allocation5] sm:$0xff]  ;;  %v1919_v28 = vld [vmem:[#allocation23] sm:$0xff]   ;;  %v1665_v33 = vld [vmem:[#allocation17] ss:$0 sm:$0xff]  ;;  %s2566_s9 = scalar_lea.vmem %s1641_s13, 32  ;;  %p2571_p7 = scmp.lt.s32.totalorder %s1641_s13, %s1641_s13 }
 0x254   :  { %510 = vperm.xlu1 %1894, %v499_v15   ;;  %1759 = vmatprep.subr.bf16.mxu0 %v1919_v28  ;;  %v3173_v31 = vld [vmem:[#allocation7 + $0x8] sm:$0xff]   ;;  %v1666_v37 = vld [vmem:[#allocation19] ss:$0 sm:$0xff]  ;;  %v3180_v48 = vld [vmem:[#allocation8] sm:$0xff]   ;;  %p2567_p6 = scmp.ne.s32.totalorder %s1641_s13, %s2566_s9  ;;  %p2572_p8 = scmp.lt.s32.totalorder %s2566_s9, %s2566_s9 }
 0x255   :  { %1750 = vmatmul.mubr.msk.bf16.vlgmr.msra.gmra.mrb[0].mxu0 %vm453_vm1, %v437_v4  ;;  %v3187_v49 = vld [vmem:[#allocation8 + $0x8] sm:$0xff]   ;;  %v1670_v58 = vld [vmem:[#allocation25] ss:$0 sm:$0xff] }
 0x256   :  { %1760 = vmatpush3.bf16.msra.mxu0 %v1919_v28  ;;  %p2573_p9 = por %p2572_p8, %p2571_p7 }
 0x258   :  { %515 = vperm.xlu1 %1894, %v500_v16   ;;  %p2574_p10 = pnand %p2573_p9, %p2567_p6 }
 0x25c   :  { %520 = vperm.xlu1 %1894, %v501_v17  }
 0x2d3   :  { %v511_v29 = vpop.permute.xlu1 %510 }
 0x2d4   :  { %v530_v38 = vmul.f32 %v1665_v33, %v511_v29 }
 0x2d6   :  { %v541_v42 = vadd.f32 %v1666_v37, %v530_v38 }
 0x2d7   :  { %v516_v32 = vpop.permute.xlu1 %515 }
 0x2d8   :  { %v531_v35 = vmul.f32 %v1665_v33, %v516_v32 }
 0x2da   :  { %v542_v39 = vadd.f32 %v1666_v37, %v531_v35  ;;  %v430_v35 = vld [vmem:[#allocation10 + $0x8] sm:$0xff] }
 0x2db   :  { %v521_v34 = vpop.permute.xlu1 %520 }
 0x2dc   :  { %v532_v36 = vmul.f32 %v1665_v33, %v521_v34  ;;  %v429_v34 = vld [vmem:[#allocation10] sm:$0xff] }
 0x2de   :  { %v543_v41 = vadd.f32 %v1666_v37, %v532_v36 }
 0x2e0   :  { %v605_v45 = vpack.c.bf16 %v543_v41, %v542_v39 }
 0x328   :  { %v491_v7 = vpop.f32.mrb[0].mxu0 }
 0x329   :  { %v1751_v8 = vpop.f32.mrb[1].mxu0  ;;  %v492_v10 = vadd.f32 %v1662_v6, %v491_v7 }
 0x32a   :  { %v494_v9 = vpop.f32.mrb[2].mxu0 }
 0x32b   :  { %v495_v11 = vadd.f32 %v1662_v6, %v494_v9  ;;  %v1752_v12 = vpop.f32.mrb[3].mxu0 }
 0x32d   :  { %v544_v13 = vpack.c.bf16 %v495_v11, %v492_v10 }
 0x32f   :  { %1756 = vmatmul.mubr.msk.bf16.vlgmr.msra.gmra.mrb[0].mxu1 %vm453_vm1, %v544_v13 }
 0x330   :  { %1767 = vmatprep.mubr.msk.bf16.mxu1 %vm453_vm1, %v3161_v18 }
 0x402   :  { %v597_v20 = vpop.f32.mrb[0].mxu1 }
 0x403   :  { %v1757_v21 = vpop.f32.mrb[1].mxu1  ;;  %v3165_v23 = vadd.f32 %v1667_v19, %v597_v20 }
 0x404   :  { %v600_v22 = vpop.f32.mrb[2].mxu1 }
 0x405   :  { %v3167_v24 = vadd.f32 %v1667_v19, %v600_v22  ;;  %v1758_v25 = vpop.f32.mrb[3].mxu1 }
 0x407   :  { %v676_v26 = vpack.c.bf16 %v3167_v24, %v3165_v23 }
 0x409   :  { %688 = vrot.lane.b32.xlu0 %v676_v26, %s2652_s21 }
 0x40d   :  { %505 = vperm.xlu0 %1893, %v498_v27  }
 0x411   :  { %756 = vrot.lane.b32.xlu0 %v676_v26, %s2653_s20 }
 0x47b   :  { %v689_v30 = vpop.permute.xlu0 %688 }
 0x47c   :  { %1765 = vmatprep.subr.bf16.mxu1 %v689_v30 }
 0x47d   :  { %1766 = vmatpush3.bf16.msra.mxu1 %v689_v30 }
 0x47e   :  { %1777 = vmatprep.subr.bf16.mxu1 %v2649_v0 }
 0x480   :  { %1768 = vmatmul.mubr.msk.bf16.vlgmr.msra.gmra.mrb[4].mxu1 %vm453_vm1, %v3173_v31 }
 0x481   :  { %1781 = vmatprep.mubr.msk.bf16.mxu1 %vm2650_vm0, %v2649_v0 }
 0x48c   :  { %v506_v40 = vpop.permute.xlu0 %505 }
 0x48d   :  { %v529_v43 = vmul.f32 %v1665_v33, %v506_v40 }
 0x48f   :  { %v540_v44 = vadd.f32 %v1666_v37, %v529_v43 }
 0x490   :  { %v757_v46 = vpop.permute.xlu0 %756 }
 0x491   :  { %v604_v47 = vpack.c.bf16 %v541_v42, %v540_v44  ;;  %1771 = vmatprep.subr.bf16.mxu0 %v757_v46 }
 0x493   :  { %1761 = vmatprep.mubr.msk.bf16.mxu0 %vm453_vm1, %v604_v47 }
 0x494   :  { %1762 = vmatmul.mubr.msk.bf16.vlgmr.msra.gmra.mrb[4].mxu0 %vm453_vm1, %v605_v45 }
 0x495   :  { %1772 = vmatpush3.bf16.msra.mxu0 %v757_v46  ;;  %1773 = vmatprep.mubr.msk.bf16.mxu0 %vm453_vm1, %v3180_v48 }
 0x496   :  { %1785 = vmatprep.subr.bf16.mxu0 %v2649_v0 }
 0x4a0   :  { %1774 = vmatmul.mubr.msk.bf16.vlgmr.msra.gmra.mrb[4].mxu0 %vm453_vm1, %v3187_v49 }
 0x4a1   :  { %1789 = vmatprep.mubr.msk.bf16.mxu0 %vm2650_vm0, %v2649_v0 }
 0x553   :  { %v1769_v50 = vpop.f32.mrb[4].mxu1 }
 0x554   :  { %v731_v51 = vpop.f32.mrb[5].mxu1 }
 0x555   :  { %818 = vrot.lane.b32.xlu1 %v731_v51, %s2652_s21  ;;  %v1770_v52 = vpop.f32.mrb[6].mxu1 }
 0x556   :  { %v734_v53 = vpop.f32.mrb[7].mxu1 }
 0x557   :  { %820 = vrot.lane.b32.xlu0 %v734_v53, %s2652_s21 }
 0x559   :  { %822 = vrot.lane.b32.xlu1 %v1769_v50, %s2652_s21 }
 0x55b   :  { %824 = vrot.lane.b32.xlu0 %v1770_v52, %s2652_s21 }
 0x573   :  { %v1775_v54 = vpop.f32.mrb[4].mxu0 }
 0x574   :  { %v799_v55 = vpop.f32.mrb[5].mxu0  ;;  %v1831_v1 = vadd.f32 %v1775_v54, %v1670_v58 }
 0x575   :  { %v1776_v56 = vpop.f32.mrb[6].mxu0  ;;  %v1833_v59 = vadd.f32 %v1670_v58, %v799_v55 }
 0x576   :  { %v802_v57 = vpop.f32.mrb[7].mxu0  ;;  %v1835_v5 = vadd.f32 %v1776_v56, %v1670_v58 }
 0x577   :  { %v1837_v61 = vadd.f32 %v1670_v58, %v802_v57 }
 0x5c7   :  { %v819_v60 = vpop.permute.xlu1 %818 }
 0x5c8   :  { %v3197_v62 = vadd.f32 %v1833_v59, %v819_v60  ;;  %v431_v59 = vld [vmem:[#allocation11] sm:$0xff]  ;;  %v432_v60 = vld [vmem:[#allocation11 + $0x8] sm:$0xff] }
 0x5c9   :  { %v821_v63 = vpop.permute.xlu0 %820 }
 0x5ca   :  { %v1682_v2 = vmul.f32 -1.442695, %v3197_v62  ;;  %v3200_v3 = vadd.f32 %v1837_v61, %v821_v63  ;;  %v433_v61 = vld [vmem:[#allocation11 + $0x10] sm:$0xff]  ;;  %v434_v63 = vld [vmem:[#allocation11 + $0x18] sm:$0xff] }
 0x5cb   :  { %v823_v4 = vpop.permute.xlu1 %822 }
 0x5cc   :  { %1926 = vpow2.f32 %v1682_v2  ;;  %v1683_v6 = vmul.f32 -1.442695, %v3200_v3  ;;  %v3203_v7 = vadd.f32 %v1831_v1, %v823_v4  ;;  %v1922_v1 = vld [vmem:[#allocation32] sm:$0xff]   ;;  %v1923_v2 = vld [vmem:[#allocation32 + $0x8] sm:$0xff]   ;;  %v1924_v4 = vld [vmem:[#allocation35] sm:$0xff]  }
 0x5cd   :  { %v825_v8 = vpop.permute.xlu0 %824  ;;  %1786 = vmatpush3.bf16.msra.mxu0 %v1922_v1 }
 0x5ce   :  { %1928 = vpow2.f32 %v1683_v6  ;;  %v1684_v9 = vmul.f32 -1.442695, %v3203_v7  ;;  %v3206_v10 = vadd.f32 %v1835_v5, %v825_v8  ;;  %1787 = vmatprep.subr.bf16.mxu0 %v2649_v0  ;;  %v1925_v5 = vld [vmem:[#allocation35 + $0x8] sm:$0xff]  }
 0x5d0   :  { %1930 = vpow2.f32 %v1684_v9  ;;  %v1685_v11 = vmul.f32 -1.442695, %v3206_v10 }
 0x5d1   :  { %1788 = vmatpush3.bf16.msra.mxu0 %v1923_v2 }
 0x5d2   :  { %1932 = vpow2.f32 %v1685_v11 }
 0x5d6   :  { %v1927_v12 = vpop.eup %1926 }
 0x5d7   :  { %v850_v13 = vadd.f32 1.0, %v1927_v12 }
 0x5d8   :  { %v1929_v14 = vpop.eup %1928 }
 0x5d9   :  { %1934 = vrcp.f32 %v850_v13  ;;  %v851_v15 = vadd.f32 1.0, %v1929_v14 }
 0x5da   :  { %v1931_v16 = vpop.eup %1930 }
 0x5db   :  { %1936 = vrcp.f32 %v851_v15  ;;  %v852_v17 = vadd.f32 1.0, %v1931_v16 }
 0x5dc   :  { %v1933_v19 = vpop.eup %1932 }
 0x5dd   :  { %1938 = vrcp.f32 %v852_v17  ;;  %v853_v20 = vadd.f32 1.0, %v1933_v19 }
 0x5df   :  { %1940 = vrcp.f32 %v853_v20 }
 0x5e3   :  { %v1935_v21 = vpop.eup %1934 }
 0x5e4   :  { %v862_v22 = vmul.f32 %v1935_v21, %v731_v51 }
 0x5e5   :  { %v1937_v25 = vpop.eup %1936 }
 0x5e6   :  { %v1900_v26 = vpack.i.bf16 %v1937_v25, %v1935_v21  ;;  %v863_v27 = vmul.f32 %v1937_v25, %v734_v53 }
 0x5e7   :  { %v1939_v28 = vpop.eup %1938 }
 0x5e8   :  { %1901 = vrot.lane.b32.xlu1 %v1900_v26, %s2653_s20  ;;  %v864_v29 = vmul.f32 %v1939_v28, %v1769_v50 }
 0x5e9   :  { %v1941_v30 = vpop.eup %1940 }
 0x5ea   :  { %v1895_v32 = vpack.i.bf16 %v1941_v30, %v1939_v28  ;;  %v865_v33 = vmul.f32 %v1941_v30, %v1770_v52 }
 0x5ec   :  { %1896 = vrot.lane.b32.xlu0 %v1895_v32, %s2653_s20 }
 0x5f0   :  { %969 = vperm.xlu0 %1893, %v429_v34  }
 0x5f4   :  { %974 = vperm.xlu0 %1893, %v430_v35  }
 0x60b   :  { %891 = vxpose.xlu1.c.b16.start [1/2] (short) (narrow) %v3180_v48, 16 }
 0x60f   :  { %892 = vxpose.xlu1.c.b16.end [2/2] (short) (narrow) %v3187_v49, 16 }
 0x65a   :  { %v1902_v36 = vpop.permute.xlu1 %1901 }
 0x65b   :  { %v1904_v37 = vunpack.i.h.bf16 %v1902_v36  ;;  %v1903_v38 = vunpack.i.l.bf16 %v1902_v36 }
 0x65d   :  { %v883_v39 = vsel %vm882_vm2, %v862_v22, %v1903_v38  ;;  %v884_v40 = vsel %vm882_vm2, %v863_v27, %v1904_v37 }
 0x65e   :  { %v887_v41 = vpack.c.bf16 %v884_v40, %v883_v39  ;;  %v1897_v42 = vpop.permute.xlu0 %1896 }
 0x65f   :  { %v1899_v43 = vunpack.i.h.bf16 %v1897_v42  ;;  %v1898_v44 = vunpack.i.l.bf16 %v1897_v42 }
 0x660   :  { %1778 = vmatpush3.bf16.msra.mxu1 %v887_v41 }
 0x661   :  { %v885_v45 = vsel %vm882_vm2, %v864_v29, %v1898_v44  ;;  %v886_v46 = vsel %vm882_vm2, %v865_v33, %v1899_v43  ;;  %1779 = vmatprep.subr.bf16.mxu1 %v2649_v0 }
 0x662   :  { %v888_v47 = vpack.c.bf16 %v886_v46, %v885_v45 }
 0x664   :  { %1780 = vmatpush3.bf16.msra.mxu1 %v888_v47 }
 0x665   :  { %1793 = vmatprep.subr.bf16.mxu1 %v1924_v4 }
 0x66f   :  { %v3225_v6 = vpop.permute.xlu0 %969 }
 0x671   :  { %v3218_v50 = vpop.trf.xlu1 }
 0x672   :  { %1782 = vmatmul.mubr.msk.bf16.vlgmr.msra.gmra.mrb[8].mxu1 %vm882_vm2, %v3218_v50 }
 0x673   :  { %1794 = vmatpush3.bf16.msra.mxu1 %v1924_v4  ;;  %v3227_v8 = vpop.permute.xlu0 %974 }
 0x674   :  { %1795 = vmatprep.subr.bf16.mxu1 %v1925_v5 }
 0x677   :  { %1796 = vmatpush3.bf16.msra.mxu1 %v1925_v5 }
 0x745   :  { %v944_v51 = vpop.f32.mrb[8].mxu1 }
 0x746   :  { %v951_v52 = vadd.f32 1e-06, %v944_v51  ;;  %v1783_v53 = vpop.f32.mrb[9].mxu1 }
 0x747   :  { %v947_v54 = vpop.f32.mrb[10].mxu1 }
 0x748   :  { %1942 = vrcp.f32 %v951_v52  ;;  %v952_v55 = vadd.f32 1e-06, %v947_v54  ;;  %v1784_v56 = vpop.f32.mrb[11].mxu1 }
 0x74a   :  { %1944 = vrcp.f32 %v952_v55 }
 0x752   :  { %v1943_v57 = vpop.eup %1942 }
 0x753   :  { %957 = vrot.lane.b32.xlu0 %v1943_v57, %s2652_s21 }
 0x754   :  { %v1945_v58 = vpop.eup %1944 }
 0x757   :  { %959 = vrot.lane.b32.xlu0 %v1945_v58, %s2652_s21 }
 0x75b   :  { %981 = vperm.xlu0 %1893, %v431_v59  }
 0x75f   :  { %986 = vperm.xlu0 %1893, %v432_v60  }
 0x763   :  { %991 = vperm.xlu0 %1893, %v433_v61  }
 0x767   :  { %996 = vperm.xlu0 %1893, %v434_v63  }
 0x7c5   :  { %v958_v9 = vpop.permute.xlu0 %957 }
 0x7c6   :  { %v963_v11 = vmul.f32 %v958_v9, %v944_v51 }
 0x7c8   :  { %v965_v12 = vadd.f32 %v963_v11, %v3165_v23 }
 0x7c9   :  { %v960_v13 = vpop.permute.xlu0 %959 }
 0x7ca   :  { %v964_v14 = vmul.f32 %v960_v13, %v947_v54  ;;  %v977_v15 = vmul.f32 %v3225_v6, %v965_v12 }
 0x7cc   :  { %v966_v16 = vadd.f32 %v964_v14, %v3167_v24  ;;  %v1005_v19 = vsel %vm882_vm2, %v977_v15, 0.0 }
 0x7ce   :  { %v978_v17 = vmul.f32 %v3227_v8, %v966_v16 }
 0x7d0   :  { %v1006_v20 = vsel %vm882_vm2, %v978_v17, 0.0 }
 0x7d1   :  { %v1007_v21 = vadd.f32 %v1006_v20, %v1005_v19 }
 0x7d3   :  { %v1008_v22 = vrot.slane %v1007_v21, 4 }
 0x7d5   :  { %v1009_v25 = vadd.f32 %v1008_v22, %v1007_v21 }
 0x7d7   :  { %v1010_v26 = vrot.slane %v1009_v25, 2 }
 0x7d9   :  { %v1011_v27 = vadd.f32 %v1010_v26, %v1009_v25  ;;  %v1687_v26 = vld [vmem:[#allocation26] ss:$0 sm:$0xff] }
 0x7da   :  { %v982_v28 = vpop.permute.xlu0 %981 }
 0x7db   :  { %v1012_v29 = vrot.slane %v1011_v27, 1  ;;  %v999_v35 = vmul.f32 %v3197_v62, %v982_v28 }
 0x7dd   :  { %v1013_v23 = vadd.f32 %v1012_v29, %v1011_v27  ;;  %v1052_v43 = vsel %vm882_vm2, %v999_v35, 0.0 }
 0x7de   :  { %v987_v30 = vpop.permute.xlu0 %986 }
 0x7df   :  { %v1015_v32 = vmul.f32 0.0625, %v1013_v23  ;;  %v1000_v33 = vmul.f32 %v3200_v3, %v987_v30  ;;  %v1688_v30 = vld [vmem:[#allocation28] ss:$0 sm:$0xff] }
 0x7e1   :  { %v1016_v34 = vsub.f32 %v977_v15, %v1015_v32  ;;  %v1017_v24 = vsub.f32 %v978_v17, %v1015_v32  ;;  %v1053_v39 = vsel %vm882_vm2, %v1000_v33, 0.0 }
 0x7e2   :  { %v992_v36 = vpop.permute.xlu0 %991  ;;  %v1054_v45 = vadd.f32 %v1053_v39, %v1052_v43 }
 0x7e3   :  { %v1018_v37 = vmul.f32 %v1016_v34, %v1016_v34  ;;  %v1019_v38 = vmul.f32 %v1017_v24, %v1017_v24  ;;  %v1001_v40 = vmul.f32 %v3203_v7, %v992_v36 }
 0x7e5   :  { %v1020_v41 = vsel %vm882_vm2, %v1018_v37, 0.0  ;;  %v1021_v42 = vsel %vm882_vm2, %v1019_v38, 0.0  ;;  %v1055_v44 = vsel %vm882_vm2, %v1001_v40, 0.0 }
 0x7e6   :  { %v1022_v3 = vadd.f32 %v1021_v42, %v1020_v41  ;;  %v997_v46 = vpop.permute.xlu0 %996  ;;  %v1056_v51 = vadd.f32 %v1055_v44, %v1054_v45 }
 0x7e7   :  { %v1002_v62 = vmul.f32 %v3206_v10, %v997_v46  ;;  %v1689_v46 = vld [vmem:[#allocation29] ss:$0 sm:$0xff] }
 0x7e8   :  { %v1023_v47 = vrot.slane %v1022_v3, 4 }
 0x7e9   :  { %v1057_v52 = vsel %vm882_vm2, %v1002_v62, 0.0 }
 0x7ea   :  { %v1024_v53 = vadd.f32 %v1023_v47, %v1022_v3  ;;  %v1058_v54 = vadd.f32 %v1057_v52, %v1056_v51 }
 0x7ec   :  { %v1025_v7 = vrot.slane %v1024_v53, 2  ;;  %v1059_v55 = vrot.slane %v1058_v54, 4 }
 0x7ee   :  { %v1026_v56 = vadd.f32 %v1025_v7, %v1024_v53  ;;  %v1060_v57 = vadd.f32 %v1059_v55, %v1058_v54  ;;  %v1690_v53 = vld [vmem:[#allocation31] ss:$0 sm:$0xff] }
 0x7f0   :  { %v1027_v58 = vrot.slane %v1026_v56, 1  ;;  %v1061_v59 = vrot.slane %v1060_v57, 2 }
 0x7f2   :  { %v1028_v60 = vadd.f32 %v1027_v58, %v1026_v56  ;;  %v1062_v61 = vadd.f32 %v1061_v59, %v1060_v57 }
 0x7f4   :  { %v1029_v63 = vmul.f32 0.0625, %v1028_v60  ;;  %v1063_v1 = vrot.slane %v1062_v61, 1 }
 0x7f6   :  { %v1030_v2 = vadd.f32 1e-05, %v1029_v63  ;;  %v1064_v4 = vadd.f32 %v1063_v1, %v1062_v61 }
 0x7f8   :  { %1946 = vrsqrt.f32 %v1030_v2  ;;  %v1066_v10 = vmul.f32 0.03125, %v1064_v4 }
 0x7fa   :  { %v1067_v5 = vsub.f32 %v999_v35, %v1066_v10  ;;  %v1068_v9 = vsub.f32 %v1000_v33, %v1066_v10  ;;  %v1069_v11 = vsub.f32 %v1001_v40, %v1066_v10  ;;  %v1070_v12 = vsub.f32 %v1002_v62, %v1066_v10  ;;  %v1691_v10 = vld [vmem:[#allocation34] ss:$0 sm:$0xff] }
 0x7fc   :  { %v1071_v13 = vmul.f32 %v1067_v5, %v1067_v5  ;;  %v1072_v14 = vmul.f32 %v1068_v9, %v1068_v9  ;;  %v1073_v15 = vmul.f32 %v1069_v11, %v1069_v11  ;;  %v1074_v16 = vmul.f32 %v1070_v12, %v1070_v12 }
 0x7fe   :  { %v1075_v17 = vsel %vm882_vm2, %v1071_v13, 0.0  ;;  %v1076_v19 = vsel %vm882_vm2, %v1072_v14, 0.0  ;;  %v1078_v21 = vsel %vm882_vm2, %v1073_v15, 0.0  ;;  %v1080_v27 = vsel %vm882_vm2, %v1074_v16, 0.0 }
 0x7ff   :  { %v1077_v20 = vadd.f32 %v1076_v19, %v1075_v17 }
 0x801   :  { %v1079_v22 = vadd.f32 %v1078_v21, %v1077_v20 }
 0x802   :  { %v1947_v25 = vpop.eup %1946 }
 0x803   :  { %v1032_v28 = vmul.f32 %v1947_v25, %v1016_v34  ;;  %v1033_v29 = vmul.f32 %v1947_v25, %v1017_v24  ;;  %v1081_v23 = vadd.f32 %v1080_v27, %v1079_v22 }
 0x805   :  { %v1040_v32 = vmul.f32 %v1687_v26, %v1032_v28  ;;  %v1041_v33 = vmul.f32 %v1687_v26, %v1033_v29  ;;  %v1082_v35 = vrot.slane %v1081_v23, 4 }
 0x807   :  { %v3249_v36 = vadd.f32 %v1688_v30, %v1041_v33  ;;  %v1083_v37 = vadd.f32 %v1082_v35, %v1081_v23  ;;  %v3251_v38 = vadd.f32 %v1688_v30, %v1040_v32 }
 0x809   :  { %v1116_v39 = vmax.f32 %v3249_v36, 0.0  ;;  %v1084_v40 = vrot.slane %v1083_v37, 2  ;;  %v1115_v41 = vmax.f32 %v3251_v38, 0.0 }
 0x80b   :  { %v1085_v42 = vadd.f32 %v1084_v40, %v1083_v37  ;;  %v1121_v34 = vpack.c.bf16 %v1116_v39, %v1115_v41 }
 0x80d   :  { %v1086_v24 = vrot.slane %v1085_v42, 1  ;;  %1790 = vmatmul.mubr.msk.bf16.vlgmr.msra.gmra.mrb[8].mxu0 %vm882_vm2, %v1121_v34 }
 0x80e   :  { %1803 = vmatprep.mubr.msk.bf16.mxu0 %vm453_vm1, %v3161_v18 }
 0x80f   :  { %v1087_v43 = vadd.f32 %v1086_v24, %v1085_v42 }
 0x811   :  { %v1088_v44 = vmul.f32 0.03125, %v1087_v43 }
 0x813   :  { %v1089_v3 = vadd.f32 1e-05, %v1088_v44 }
 0x815   :  { %1948 = vrsqrt.f32 %v1089_v3 }
 0x81f   :  { %v1949_v45 = vpop.eup %1948 }
 0x820   :  { %v1093_v62 = vmul.f32 %v1949_v45, %v1069_v11  ;;  %v1094_v47 = vmul.f32 %v1949_v45, %v1070_v12  ;;  %v1091_v51 = vmul.f32 %v1949_v45, %v1067_v5  ;;  %v1092_v52 = vmul.f32 %v1949_v45, %v1068_v9 }
 0x822   :  { %v1103_v54 = vmul.f32 %v1689_v46, %v1093_v62  ;;  %v1104_v7 = vmul.f32 %v1689_v46, %v1094_v47  ;;  %v1101_v55 = vmul.f32 %v1689_v46, %v1091_v51  ;;  %v1102_v56 = vmul.f32 %v1689_v46, %v1092_v52 }
 0x824   :  { %v1113_v57 = vadd.f32 %v1690_v53, %v1103_v54  ;;  %v1114_v58 = vadd.f32 %v1690_v53, %v1104_v7  ;;  %v1111_v59 = vadd.f32 %v1690_v53, %v1101_v55  ;;  %v1112_v60 = vadd.f32 %v1690_v53, %v1102_v56 }
 0x826   :  { %v1119_v18 = vmax.f32 %v1113_v57, 0.0  ;;  %v1120_v61 = vmax.f32 %v1114_v58, 0.0  ;;  %v1117_v63 = vmax.f32 %v1111_v59, 0.0  ;;  %v1118_v1 = vmax.f32 %v1112_v60, 0.0 }
 0x828   :  { %v1190_v2 = vpack.c.bf16 %v1120_v61, %v1119_v18  ;;  %v1189_v4 = vpack.c.bf16 %v1118_v1, %v1117_v63 }
 0x82a   :  { %1797 = vmatprep.mubr.msk.bf16.mxu1 %vm882_vm2, %v1189_v4 }
 0x82b   :  { %1798 = vmatmul.mubr.msk.bf16.vlgmr.msra.gmra.mrb[12].mxu1 %vm882_vm2, %v1190_v2 }
 0x82c   :  { %1809 = vmatprep.mubr.msk.bf16.mxu1 %vm453_vm1, %v3180_v48 }
 0x8e0   :  { %v1182_v5 = vpop.f32.mrb[8].mxu0 }
 0x8e1   :  { %v1791_v9 = vpop.f32.mrb[9].mxu0  ;;  %v3266_v12 = vadd.f32 %v1691_v10, %v1182_v5 }
 0x8e2   :  { %v1185_v11 = vpop.f32.mrb[10].mxu0 }
 0x8e3   :  { %v3268_v13 = vadd.f32 %v1691_v10, %v1185_v11  ;;  %v1792_v14 = vpop.f32.mrb[11].mxu0 }
 0x8e5   :  { %v1269_v15 = vpack.c.bf16 %v3268_v13, %v3266_v12 }
 0x8e7   :  { %1323 = vrot.lane.b32.xlu1 %v1269_v15, %s2653_s20  ;;  %1271 = vrot.lane.b32.xlu0 %v1269_v15, %s2652_s21 }
 0x959   :  { %v1324_v16 = vpop.permute.xlu1 %1323  ;;  %v1272_v17 = vpop.permute.xlu0 %1271 }
 0x95a   :  { %1801 = vmatprep.subr.bf16.mxu0 %v1272_v17  ;;  %1807 = vmatprep.subr.bf16.mxu1 %v1324_v16 }
 0x95b   :  { %1802 = vmatpush3.bf16.msra.mxu0 %v1272_v17  ;;  %1808 = vmatpush3.bf16.msra.mxu1 %v1324_v16 }
 0x95c   :  { %1813 = vmatprep.subr.bf16.mxu0 %v2649_v0 }
 0x95e   :  { %1804 = vmatmul.mubr.msk.bf16.vlgmr.msra.gmra.mrb[12].mxu0 %vm453_vm1, %v3173_v31  ;;  %1810 = vmatmul.mubr.msk.bf16.vlgmr.msra.gmra.mrb[12].mxu1 %vm453_vm1, %v3187_v49  ;;  %v1695_v31 = vld [vmem:[#allocation37] ss:$0 sm:$0xff] }
 0x95f   :  { %1817 = vmatprep.mubr.msk.bf16.mxu0 %vm2650_vm0, %v2649_v0  ;;  %1825 = vmatprep.mubr.msk.f32.mxu1 %vm2650_vm0, %v2649_v0 }
 0xa31   :  { %v1805_v48 = vpop.f32.mrb[12].mxu0  ;;  %v1811_v19 = vpop.f32.mrb[12].mxu1 }
 0xa32   :  { %v1308_v20 = vpop.f32.mrb[13].mxu0  ;;  %v1360_v21 = vpop.f32.mrb[13].mxu1  ;;  %v1839_v32 = vadd.f32 %v1811_v19, %v1695_v31 }
 0xa33   :  { %1379 = vrot.lane.b32.xlu0 %v1308_v20, %s2652_s21  ;;  %v1806_v22 = vpop.f32.mrb[14].mxu0  ;;  %v1812_v25 = vpop.f32.mrb[14].mxu1  ;;  %v1841_v49 = vadd.f32 %v1695_v31, %v1360_v21 }
 0xa34   :  { %v1311_v26 = vpop.f32.mrb[15].mxu0  ;;  %v1363_v27 = vpop.f32.mrb[15].mxu1  ;;  %v1843_v40 = vadd.f32 %v1812_v25, %v1695_v31 }
 0xa35   :  { %1381 = vrot.lane.b32.xlu1 %v1311_v26, %s2652_s21  ;;  %v1845_v29 = vadd.f32 %v1695_v31, %v1363_v27 }
 0xa37   :  { %1383 = vrot.lane.b32.xlu0 %v1805_v48, %s2652_s21 }
 0xa39   :  { %1385 = vrot.lane.b32.xlu1 %v1806_v22, %s2652_s21 }
 0xaa5   :  { %v1380_v28 = vpop.permute.xlu0 %1379 }
 0xaa6   :  { %v1842_v23 = vadd.f32 %v1841_v49, %v1380_v28 }
 0xaa7   :  { %v1382_v30 = vpop.permute.xlu1 %1381 }
 0xaa8   :  { %v1704_v33 = vmul.f32 -1.442695, %v1842_v23  ;;  %v1846_v35 = vadd.f32 %v1845_v29, %v1382_v30 }
 0xaa9   :  { %v1384_v37 = vpop.permute.xlu0 %1383 }
 0xaaa   :  { %1950 = vpow2.f32 %v1704_v33  ;;  %v1705_v42 = vmul.f32 -1.442695, %v1846_v35  ;;  %v1840_v34 = vadd.f32 %v1839_v32, %v1384_v37 }
 0xaab   :  { %v1386_v24 = vpop.permute.xlu1 %1385 }
 0xaac   :  { %1952 = vpow2.f32 %v1705_v42  ;;  %v1706_v43 = vmul.f32 -1.442695, %v1840_v34  ;;  %v1844_v44 = vadd.f32 %v1843_v40, %v1386_v24 }
 0xaae   :  { %1954 = vpow2.f32 %v1706_v43  ;;  %v1707_v3 = vmul.f32 -1.442695, %v1844_v44 }
 0xab0   :  { %1956 = vpow2.f32 %v1707_v3 }
 0xab4   :  { %v1951_v45 = vpop.eup %1950 }
 0xab5   :  { %v1411_v46 = vadd.f32 1.0, %v1951_v45 }
 0xab6   :  { %v1953_v62 = vpop.eup %1952 }
 0xab7   :  { %1958 = vrcp.f32 %v1411_v46  ;;  %v1412_v47 = vadd.f32 1.0, %v1953_v62 }
 0xab8   :  { %v1955_v51 = vpop.eup %1954 }
 0xab9   :  { %1960 = vrcp.f32 %v1412_v47  ;;  %v1413_v52 = vadd.f32 1.0, %v1955_v51 }
 0xaba   :  { %v1957_v53 = vpop.eup %1956 }
 0xabb   :  { %1962 = vrcp.f32 %v1413_v52  ;;  %v1414_v54 = vadd.f32 1.0, %v1957_v53 }
 0xabd   :  { %1964 = vrcp.f32 %v1414_v54 }
 0xac1   :  { %v1959_v7 = vpop.eup %1958 }
 0xac2   :  { %v1423_v55 = vmul.f32 %v1959_v7, %v1308_v20 }
 0xac3   :  { %v1961_v56 = vpop.eup %1960 }
 0xac4   :  { %v1905_v57 = vpack.i.bf16 %v1961_v56, %v1959_v7  ;;  %v1424_v58 = vmul.f32 %v1961_v56, %v1311_v26 }
 0xac5   :  { %v1963_v59 = vpop.eup %1962 }
 0xac6   :  { %1906 = vrot.lane.b32.xlu0 %v1905_v57, %s2653_s20  ;;  %v1425_v60 = vmul.f32 %v1963_v59, %v1805_v48 }
 0xac7   :  { %v1965_v18 = vpop.eup %1964 }
 0xac8   :  { %v1910_v61 = vpack.i.bf16 %v1965_v18, %v1963_v59  ;;  %v1426_v63 = vmul.f32 %v1965_v18, %v1806_v22  ;;  %v1709_v59 = vld [vmem:[#allocation38] ss:$0 sm:$0xff] }
 0xaca   :  { %1911 = vrot.lane.b32.xlu1 %v1910_v61, %s2653_s20  ;;  %v1710_v61 = vld [vmem:[#allocation40] ss:$0 sm:$0xff] }
 0xb38   :  { %v1907_v1 = vpop.permute.xlu0 %1906 }
 0xb39   :  { %v1909_v2 = vunpack.i.h.bf16 %v1907_v1  ;;  %v1908_v4 = vunpack.i.l.bf16 %v1907_v1 }
 0xb3b   :  { %v1443_v10 = vsel %vm882_vm2, %v1423_v55, %v1908_v4  ;;  %v1444_v5 = vsel %vm882_vm2, %v1424_v58, %v1909_v2 }
 0xb3c   :  { %v1447_v9 = vpack.c.bf16 %v1444_v5, %v1443_v10  ;;  %v1912_v11 = vpop.permute.xlu1 %1911 }
 0xb3d   :  { %v1914_v14 = vunpack.i.h.bf16 %v1912_v11  ;;  %v1913_v15 = vunpack.i.l.bf16 %v1912_v11 }
 0xb3e   :  { %1814 = vmatpush3.bf16.msra.mxu0 %v1447_v9 }
 0xb3f   :  { %v1445_v16 = vsel %vm882_vm2, %v1425_v60, %v1913_v15  ;;  %v1446_v17 = vsel %vm882_vm2, %v1426_v63, %v1914_v14  ;;  %1815 = vmatprep.subr.bf16.mxu0 %v2649_v0  ;;  %v2654_v0 = vmov 0.0|0.0   ;;  %v1558_v15 = vld [vmem:[#allocation13] sm:$0x3] }
 0xb40   :  { %v1448_v48 = vpack.c.bf16 %v1446_v17, %v1445_v16  ;;  %1828 = vmatprep.subr.bf16.mxu1 %v2654_v0 }
 0xb42   :  { %1816 = vmatpush3.bf16.msra.mxu0 %v1448_v48 }
 0xb45   :  { %1818 = vmatmul.mubr.msk.bf16.vlgmr.msra.gmra.mrb[16].mxu0 %vm882_vm2, %v3218_v50 }
 0xc18   :  { %v1483_v19 = vpop.f32.mrb[16].mxu0 }
 0xc19   :  { %v1490_v20 = vadd.f32 1e-06, %v1483_v19  ;;  %v1819_v21 = vpop.f32.mrb[17].mxu0 }
 0xc1a   :  { %v1486_v22 = vpop.f32.mrb[18].mxu0 }
 0xc1b   :  { %1966 = vrcp.f32 %v1490_v20  ;;  %v1491_v25 = vadd.f32 1e-06, %v1486_v22  ;;  %v1820_v26 = vpop.f32.mrb[19].mxu0 }
 0xc1d   :  { %1968 = vrcp.f32 %v1491_v25 }
 0xc25   :  { %v1967_v27 = vpop.eup %1966 }
 0xc26   :  { %1496 = vrot.lane.b32.xlu0 %v1967_v27, %s2652_s21 }
 0xc27   :  { %v1969_v31 = vpop.eup %1968 }
 0xc28   :  { %1498 = vrot.lane.b32.xlu1 %v1969_v31, %s2652_s21 }
 0xc98   :  { %v1497_v49 = vpop.permute.xlu0 %1496 }
 0xc99   :  { %v1502_v28 = vmul.f32 %v1497_v49, %v1483_v19 }
 0xc9a   :  { %v1499_v29 = vpop.permute.xlu1 %1498 }
 0xc9b   :  { %v1504_v50 = vadd.f32 %v1502_v28, %v3266_v12  ;;  %v1503_v23 = vmul.f32 %v1499_v29, %v1486_v22 }
 0xc9d   :  { %v1506_v30 = vmul.f32 %v1504_v50, %v3225_v6  ;;  %v1505_v32 = vadd.f32 %v1503_v23, %v3268_v13 }
 0xc9f   :  { %v1507_v33 = vmul.f32 %v1505_v32, %v3227_v8  ;;  %v1510_v35 = vsel %vm882_vm2, %v1506_v30, 0.0 }
 0xca1   :  { %v1511_v37 = vsel %vm882_vm2, %v1507_v33, 0.0 }
 0xca2   :  { %v1512_v40 = vadd.f32 %v1511_v37, %v1510_v35 }
 0xca4   :  { %v1513_v42 = vrot.slane %v1512_v40, 4 }
 0xca6   :  { %v1514_v34 = vadd.f32 %v1513_v42, %v1512_v40 }
 0xca8   :  { %v1515_v24 = vrot.slane %v1514_v34, 2 }
 0xcaa   :  { %v1516_v43 = vadd.f32 %v1515_v24, %v1514_v34 }
 0xcac   :  { %v1517_v44 = vrot.slane %v1516_v43, 1 }
 0xcae   :  { %v1518_v3 = vadd.f32 %v1517_v44, %v1516_v43 }
 0xcb0   :  { %v1519_v45 = vmul.f32 0.0625, %v1518_v3 }
 0xcb2   :  { %v1520_v12 = vsub.f32 %v1506_v30, %v1519_v45  ;;  %v1521_v46 = vsub.f32 %v1507_v33, %v1519_v45 }
 0xcb4   :  { %v1522_v62 = vmul.f32 %v1520_v12, %v1520_v12  ;;  %v1523_v6 = vmul.f32 %v1521_v46, %v1521_v46 }
 0xcb6   :  { %v1524_v13 = vsel %vm882_vm2, %v1522_v62, 0.0  ;;  %v1525_v8 = vsel %vm882_vm2, %v1523_v6, 0.0 }
 0xcb7   :  { %v1526_v47 = vadd.f32 %v1525_v8, %v1524_v13 }
 0xcb9   :  { %v1527_v51 = vrot.slane %v1526_v47, 4 }
 0xcbb   :  { %v1528_v52 = vadd.f32 %v1527_v51, %v1526_v47 }
 0xcbd   :  { %v1529_v53 = vrot.slane %v1528_v52, 2 }
 0xcbf   :  { %v1530_v54 = vadd.f32 %v1529_v53, %v1528_v52 }
 0xcc1   :  { %v1531_v7 = vrot.slane %v1530_v54, 1 }
 0xcc3   :  { %v1532_v55 = vadd.f32 %v1531_v7, %v1530_v54 }
 0xcc5   :  { %v1533_v56 = vmul.f32 0.0625, %v1532_v55 }
 0xcc7   :  { %v1534_v57 = vadd.f32 1e-05, %v1533_v56 }
 0xcc9   :  { %1970 = vrsqrt.f32 %v1534_v57 }
 0xcd3   :  { %v1971_v58 = vpop.eup %1970 }
 0xcd4   :  { %v1536_v60 = vmul.f32 %v1971_v58, %v1520_v12  ;;  %v1537_v18 = vmul.f32 %v1971_v58, %v1521_v46 }
 0xcd6   :  { %v1544_v63 = vmul.f32 %v1709_v59, %v1536_v60  ;;  %v1545_v1 = vmul.f32 %v1709_v59, %v1537_v18 }
 0xcd8   :  { %v1552_v2 = vadd.f32 %v1710_v61, %v1544_v63  ;;  %v1553_v4 = vadd.f32 %v1710_v61, %v1545_v1 }
 0xcda   :  { %v1554_v10 = vmax.f32 %v1552_v2, 0.0  ;;  %v1555_v5 = vmax.f32 %v1553_v4, 0.0 }
 0xcdc   :  { %v1556_v9 = vadd.f32 %v1554_v10, %v1115_v41  ;;  %v1557_v11 = vadd.f32 %v1555_v5, %v1116_v39 }
 0xcde   :  { %v1829_v14 = vpack.c.bf16 %v1557_v11, %v1556_v9 }
 0xce0   :  { %1830 = vmatpush3.bf16.msra.mxu1 %v1829_v14 }
 0xce3   :  { %1826 = vmatmul.mubr.msk.f32.vlgmr.msra.gmra.mrb[16].mxu1 %vm453_vm1, %v1558_v15 }
 0xdb6   :  { %v1628_v16 = vpop.f32.mrb[16].mxu1 }
 0xdb7   :  { %v1827_v17 = vpop.f32.mrb[17].mxu1  ;;  %1633 = vst.msk [vmem:[#allocation44] sm:$0x3] %vm1632_vm3, %v1628_v16 }
 0xdb8   :  { %2577 = shalt.err (!%p2574_p10)
}
 0xdb9   :  { %s3407_s12 = sld [smem:[#allocation74_spill]] }
 0xdbf   :  { %s2578_s5 = scalar_lea.hbm %s3407_s12, 32 }
 0xdc0   :  { %p2579_p11 = scmp.ne.s32.totalorder %s3407_s12, %s2578_s5  ;;  %p2582_p12 = scmp.lt.u32.totalorder %s2578_s5, %s3407_s12 }
 0xdc2   :  { %p2584_p13 = pnand %p2582_p12, %p2579_p11 }
 0xdc4   :  { %2587 = shalt.err (!%p2584_p13)
}
 0xdc5   :  { %1643 = dma.vmem_to_hbm [thread:$0]  %s1641_s13, 32, %s3407_s12, [#allocation4]  }
 0xdc6   :  { %2616 = dma.done.wait [#allocation4], 32  }
 0xdc7   :  { %2617 = vsyncadd [#allocation4], 4294967264 }
 0xdc8   :  { %1647 = vsyncpa [#allocation3], 1 }
 0xdc9   :  { %1648 = vsyncpa [#allocation6], 1 }
 0xdca   :  { %1649 = vsyncpa [#allocation9], 1 }
 0xdcb   :  { %1650 = vsyncpa [#allocation12], 1 }
 0xdcc   :  { %1651 = vsyncpa [#allocation15], 1 }
 0xdcd   :  { %1652 = vsyncpa [#allocation18], 1 }
 0xdce   :  { %1653 = vsyncpa [#allocation21], 1 }
 0xdcf   :  { %1654 = vsyncpa [#allocation24], 1 }
 0xdd0   :  { %1655 = vsyncpa [#allocation27], 1 }
 0xdd1   :  { %1656 = vsyncpa [#allocation30], 1 }
 0xdd2   :  { %1657 = vsyncpa [#allocation33], 1 }
 0xdd3   :  { %1658 = vsyncpa [#allocation36], 1 }
 0xdd4   :  { %1659 = vsyncpa [#allocation39], 1 }
 0xdd5   :  { %1660 = vsyncpa [#allocation42], 1 }
 0xdd6   :  { %1661 = vsyncpa [#allocation4], 1 }

</bundles_post_ra>
